<compile_context>
chip_gen: v6e
topology: v6e:2x2x1
jax: 0.10.0
libtpu: 0.0.40
codegen_flags: <defaults>
</compile_context>

<pallas_src>
import functools
import math

import jax
import jax.numpy as jnp
from jax import lax
from jax.experimental import pallas as pl
from jax.experimental.pallas import tpu as pltpu


def _round_up(x, m):
    return ((x + m - 1) // m) * m


# -----------------------------------------------------------------------------
# Kernel: multi-head attention + fused output projection for one
# (batch-block, q-tile) grid step.
# -----------------------------------------------------------------------------
def _self_attention_kernel(q_ref, k_ref, v_ref, mask_ref,
                           wq_ref, wk_ref, wv_ref, wo_ref, bo_ref,
                           out_ref, k_scr, v_scr, *, nhead, d_model, scale):
    bn, tq, E = q_ref.shape

    # --- K/V projection: once per batch block, reused for every q tile. -------
    @pl.when(pl.program_id(1) == 0)
    def _project_kv():
        for b in range(bn):                      # bn is a small static constant
            k_scr[b] = jnp.dot(k_ref[b], wk_ref[...],
                               preferred_element_type=jnp.float32
                               ).astype(jnp.bfloat16)
            v_scr[b] = jnp.dot(v_ref[b], wv_ref[...],
                               preferred_element_type=jnp.float32
                               ).astype(jnp.bfloat16)

    wq = wq_ref[...]
    wo = wo_ref[...]
    bo = bo_ref[0]

    for b in range(bn):
        # Full-width Q projection: one lane-dense MXU matmul (bf16 in, f32 acc)
        # with the 1/sqrt(E) scale folded in (O(tq*E) VPU work).
        q = jnp.dot(q_ref[b], wq, preferred_element_type=jnp.float32) * scale
        qb = q.astype(jnp.bfloat16)              # (tq, E)
        kb = k_scr[b]                            # (Lk, E) bf16
        vb = v_scr[b]                            # (Lk, E) bf16

        # Additive mask bias, computed once (outside the head loop).
        mbias = jnp.where(mask_ref[b].astype(jnp.int32) == 0,
                          -1e20, 0.0).astype(jnp.float32)          # (tq, Lk)

        out = jnp.zeros((tq, E), jnp.float32)
        # TODO(synk): at realistic nhead use lax.fori_loop(unroll=True) with
        # dynamic lane slices to bound vreg live ranges; static unroll is fine
        # for nhead=4.
        for h in range(nhead):
            sl = slice(h * d_model, (h + 1) * d_model)
            energy = lax.dot_general(qb[:, sl], kb[:, sl],
                                     (((1,), (1,)), ((), ())),
                                     preferred_element_type=jnp.float32)
            energy = energy + mbias                                 # (tq, Lk)
            m = jnp.max(energy, axis=-1, keepdims=True)
            p = jnp.exp(energy - m)
            attn = p * pl.reciprocal(jnp.sum(p, axis=-1, keepdims=True),
                                     approx=True)
            ctx = jnp.dot(attn.astype(jnp.bfloat16), vb[:, sl],
                          preferred_element_type=jnp.float32)       # (tq, d)
            # Fused output projection: no ctx scratch, no concat.
            out = out + jnp.dot(ctx.astype(jnp.bfloat16), wo[sl, :],
                                preferred_element_type=jnp.float32)

        out_ref[b] = (out + bo).astype(out_ref.dtype)


# -----------------------------------------------------------------------------
# Wrapper
# -----------------------------------------------------------------------------
def self_attention(values, keys, queries, mask, wq, wk, wv, wo, bo, *, nhead):
    """Pallas TPU implementation of SelfAttention.forward.

    values/keys/queries: (N, L, E) float arrays.
    mask: None or broadcastable to (N, 1, Lq, Lk) (0 = masked).
    wq/wk/wv: (d_model, d_model) shared per-head weights, stored (in, out).
    wo: (E, E) output-projection weight, stored (in, out); bo: (E,) bias.
    """
    N, Lq, E = queries.shape
    Lk = keys.shape[1]
    d_model = E // nhead
    assert d_model * nhead == E, "Embedding size must be divisible by nhead"

    # Per-head weights -> block-diagonal full-width bf16 weights (one lane-dense
    # matmul per projection).  Right call while d_model < 128.
    # TODO(synk): for d_model >= 128 skip kron and apply the shared (d,d) weight
    # to a (N*L*nhead, d)-reshaped activation instead (kron is an nhead-fold
    # FLOP/byte blow-up there).
    eye = jnp.eye(nhead, dtype=jnp.float32)
    wq_full = jnp.kron(eye, wq.astype(jnp.float32)).astype(jnp.bfloat16)
    wk_full = jnp.kron(eye, wk.astype(jnp.float32)).astype(jnp.bfloat16)
    wv_full = jnp.kron(eye, wv.astype(jnp.float32)).astype(jnp.bfloat16)
    wo_bf = wo.astype(jnp.bfloat16)
    bo_2d = bo.reshape(1, E).astype(jnp.float32)

    # bf16 activations: halve HBM/VMEM traffic, feed the MXU natively.
    q_in = queries.astype(jnp.bfloat16)
    k_in = keys.astype(jnp.bfloat16)
    v_in = values.astype(jnp.bfloat16)

    # Compact int8 mask with the (broadcast) head axis dropped.
    if mask is None:
        mask3 = jnp.ones((N, Lq, Lk), jnp.int8)
    else:
        m = mask[:, 0] if mask.ndim == 4 else mask
        mask3 = jnp.broadcast_to(m, (N, Lq, Lk)).astype(jnp.int8)

    # Query tiling: sublane-aligned, bounded independent of Lq; pad q axis
    # host-side and slice the result back.
    tq = _round_up(Lq, 8) if Lq <= 128 else 128
    Lq_pad = _round_up(Lq, tq)
    if Lq_pad != Lq:
        q_in = jnp.pad(q_in, ((0, 0), (0, Lq_pad - Lq), (0, 0)))
        mask3 = jnp.pad(mask3, ((0, 0), (0, Lq_pad - Lq), (0, 0)),
                        constant_values=1)   # padded rows attend everything

    # Fatten grid steps: fold the whole batch into one block when the working
    # set is tiny (demo shapes), otherwise one batch element per step.
    bn = N if (N <= 8 and N * (Lq_pad + 2 * Lk) * E * 2 <= (256 << 10)) else 1
    grid = (N // bn, Lq_pad // tq)

    # Derived VMEM budget: double-buffered tiles + weights + scratch + headroom.
    def nbytes(shape, dt):
        return math.prod(shape) * jnp.dtype(dt).itemsize
    working = 2 * (nbytes((bn, tq, E), jnp.bfloat16)          # q
                   + 2 * nbytes((bn, Lk, E), jnp.bfloat16)    # k, v
                   + nbytes((bn, tq, Lk), jnp.int8)           # mask
                   + nbytes((bn, tq, E), jnp.float32))        # out
    working += 4 * nbytes((E, E), jnp.bfloat16) + nbytes((1, E), jnp.float32)
    working += 2 * nbytes((bn, Lk, E), jnp.bfloat16)          # k/v scratch
    vmem_limit = int(min(max(2 * working + (4 << 20), 8 << 20), 32 << 20))

    kernel = functools.partial(_self_attention_kernel, nhead=nhead,
                               d_model=d_model, scale=float(1.0 / (E ** 0.5)))

    out = pl.pallas_call(
        kernel,
        out_shape=jax.ShapeDtypeStruct((N, Lq_pad, E), jnp.float32),
        grid=grid,
        in_specs=[
            pl.BlockSpec((bn, tq, E), lambda b, qi: (b, qi, 0)),    # queries
            pl.BlockSpec((bn, Lk, E), lambda b, qi: (b, 0, 0)),     # keys
            pl.BlockSpec((bn, Lk, E), lambda b, qi: (b, 0, 0)),     # values
            pl.BlockSpec((bn, tq, Lk), lambda b, qi: (b, qi, 0)),   # mask (int8)
            pl.BlockSpec((E, E), lambda b, qi: (0, 0)),             # wq block-diag
            pl.BlockSpec((E, E), lambda b, qi: (0, 0)),             # wk block-diag
            pl.BlockSpec((E, E), lambda b, qi: (0, 0)),             # wv block-diag
            pl.BlockSpec((E, E), lambda b, qi: (0, 0)),             # wo
            pl.BlockSpec((1, E), lambda b, qi: (0, 0)),             # bo
        ],
        out_specs=pl.BlockSpec((bn, tq, E), lambda b, qi: (b, qi, 0)),
        scratch_shapes=[pltpu.VMEM((bn, Lk, E), jnp.bfloat16),      # projected K
                        pltpu.VMEM((bn, Lk, E), jnp.bfloat16)],     # projected V
        compiler_params=pltpu.CompilerParams(
            dimension_semantics=("parallel", "arbitrary"),
            vmem_limit_bytes=vmem_limit),
    )(q_in, k_in, v_in, mask3, wq_full, wk_full, wv_full, wo_bf, bo_2d)

    return out[:, :Lq]


# -----------------------------------------------------------------------------
# Pure-JAX f32 reference (mirrors the PyTorch module exactly)
# -----------------------------------------------------------------------------
def self_attention_ref(values, keys, queries, mask, wq, wk, wv, wo, bo, *, nhead):
    N, Lq, E = queries.shape
    Lk = keys.shape[1]
    d = E // nhead
    v = values.reshape(N, Lk, nhead, d) @ wv
    k = keys.reshape(N, Lk, nhead, d) @ wk
    q = queries.reshape(N, Lq, nhead, d) @ wq
    energy = jnp.einsum('nqhd,nkhd->nhqk', q, k)
    if mask is not None:
        energy = jnp.where(mask == 0, -1e20, energy)
    attn = jax.nn.softmax(energy / (E ** 0.5), axis=3)
    out = jnp.einsum('nhqk,nkhd->nqhd', attn, v).reshape(N, Lq, E)
    return out @ wo + bo


# -----------------------------------------------------------------------------
if __name__ == "__main__":
    embedding_size = 32          # E
    nhead = 4                    # -> d_model = 8
    d_model = embedding_size // nhead
    N, seq = 2, 8                # batch, sequence length (Lq = Lk = seq)

    key = jax.random.PRNGKey(0)
    kv_, kk_, kq_, kwq, kwk, kwv, kwo = jax.random.split(key, 7)

    values = jax.random.normal(kv_, (N, seq, embedding_size), jnp.float32)
    keys = jax.random.normal(kk_, (N, seq, embedding_size), jnp.float32)
    queries = jax.random.normal(kq_, (N, seq, embedding_size), jnp.float32)

    wq = jax.random.normal(kwq, (d_model, d_model), jnp.float32) / (d_model ** 0.5)
    wk = jax.random.normal(kwk, (d_model, d_model), jnp.float32) / (d_model ** 0.5)
    wv = jax.random.normal(kwv, (d_model, d_model), jnp.float32) / (d_model ** 0.5)
    wo = jax.random.normal(kwo, (embedding_size, embedding_size),
                           jnp.float32) / (embedding_size ** 0.5)
    bo = jnp.zeros((embedding_size,), jnp.float32)

    # Causal mask shaped (N, 1, Lq, Lk), as used in decoder self-attention.
    mask = jnp.broadcast_to(
        jnp.tril(jnp.ones((seq, seq), jnp.float32))[None, None],
        (N, 1, seq, seq))

    out = self_attention(values, keys, queries, mask, wq, wk, wv, wo, bo,
                         nhead=nhead)
    out = jax.block_until_ready(out)

    assert out.shape == (N, seq, embedding_size)
    assert bool(jnp.all(jnp.isfinite(out)))

    ref = self_attention_ref(values, keys, queries, mask, wq, wk, wv, wo, bo,
                             nhead=nhead)
    max_err = float(jnp.max(jnp.abs(out - ref)))
    assert max_err < 1e-1, f"kernel/reference mismatch: max |err| = {max_err}"
    print("KERNEL_OK")
</pallas_src>

<mosaic_0001>
module attributes {stable_mosaic.version = 11 : i64} {
  func.func @_self_attention_kernel(%arg0: i32, %arg1: i32, %arg2: memref<2x8x32xbf16, #tpu.memory_space<vmem>>, %arg3: memref<2x8x32xbf16, #tpu.memory_space<vmem>>, %arg4: memref<2x8x32xbf16, #tpu.memory_space<vmem>>, %arg5: memref<2x8x8xi8, #tpu.memory_space<vmem>>, %arg6: memref<32x32xbf16, #tpu.memory_space<vmem>>, %arg7: memref<32x32xbf16, #tpu.memory_space<vmem>>, %arg8: memref<32x32xbf16, #tpu.memory_space<vmem>>, %arg9: memref<32x32xbf16, #tpu.memory_space<vmem>>, %arg10: memref<1x32xf32, #tpu.memory_space<vmem>>, %arg11: memref<2x8x32xf32, #tpu.memory_space<vmem>>, %arg12: memref<2x8x32xbf16, #tpu.memory_space<vmem>>, %arg13: memref<2x8x32xbf16, #tpu.memory_space<vmem>>) attributes {dimension_semantics = [#tpu.dimension_semantics<parallel>, #tpu.dimension_semantics<arbitrary>], iteration_bounds = array<i64: 1, 1>, scalar_prefetch = 0 : i64, scratch_operands = 2 : i64, tpu.core_type = #tpu.core_type<tc>, window_params = [{transform_indices = @transform_0, window_bounds = array<i64: 2, 8, 32>}, {transform_indices = @transform_1, window_bounds = array<i64: 2, 8, 32>}, {transform_indices = @transform_2, window_bounds = array<i64: 2, 8, 32>}, {transform_indices = @transform_3, window_bounds = array<i64: 2, 8, 8>}, {pipeline_mode = #tpu.pipeline_mode<synchronous>, transform_indices = @transform_4, window_bounds = array<i64: 32, 32>}, {pipeline_mode = #tpu.pipeline_mode<synchronous>, transform_indices = @transform_5, window_bounds = array<i64: 32, 32>}, {pipeline_mode = #tpu.pipeline_mode<synchronous>, transform_indices = @transform_6, window_bounds = array<i64: 32, 32>}, {pipeline_mode = #tpu.pipeline_mode<synchronous>, transform_indices = @transform_7, window_bounds = array<i64: 32, 32>}, {pipeline_mode = #tpu.pipeline_mode<synchronous>, transform_indices = @transform_8, window_bounds = array<i64: 1, 32>}, {transform_indices = @transform_9, window_bounds = array<i64: 2, 8, 32>}]} {
    %c0_i32 = arith.constant 0 : i32
    %0 = arith.cmpi eq, %arg1, %c0_i32 : i32
    %1 = arith.extui %0 : i1 to i32
    %c0_i32_0 = arith.constant 0 : i32
    %2 = arith.cmpi ne, %1, %c0_i32_0 : i32
    scf.if %2 {
      %c0_86 = arith.constant 0 : index
      %c0_87 = arith.constant 0 : index
      %c0_88 = arith.constant 0 : index
      %225 = vector.load %arg3[%c0_86, %c0_87, %c0_88] : memref<2x8x32xbf16, #tpu.memory_space<vmem>>, vector<1x8x32xbf16>
      %226 = vector.shape_cast %225 : vector<1x8x32xbf16> to vector<8x32xbf16>
      %c0_89 = arith.constant 0 : index
      %c0_90 = arith.constant 0 : index
      %227 = vector.load %arg7[%c0_89, %c0_90] : memref<32x32xbf16, #tpu.memory_space<vmem>>, vector<32x32xbf16>
      %cst_91 = arith.constant dense<0.000000e+00> : vector<8x32xf32>
      %228 = tpu.matmul %226, %227, %cst_91 {dimension_numbers = #tpu.dot_dimension_numbers<[1], [0], [0], [1], [0, 0, 1, 1], [], []>} : vector<8x32xbf16>, vector<32x32xbf16>, vector<8x32xf32> -> vector<8x32xf32>
      %229 = arith.truncf %228 : vector<8x32xf32> to vector<8x32xbf16>
      %c0_92 = arith.constant 0 : index
      %c0_93 = arith.constant 0 : index
      %c0_94 = arith.constant 0 : index
      %230 = vector.load %arg12[%c0_92, %c0_93, %c0_94] : memref<2x8x32xbf16, #tpu.memory_space<vmem>>, vector<1x8x32xbf16>
      %231 = vector.shape_cast %230 : vector<1x8x32xbf16> to vector<8x32xbf16>
      %232 = vector.shape_cast %229 : vector<8x32xbf16> to vector<1x8x32xbf16>
      tpu.vector_store %arg12[%c0_92, %c0_93, %c0_94], %232 {strides = array<i32>} : memref<2x8x32xbf16, #tpu.memory_space<vmem>>, vector<1x8x32xbf16>,
      %c0_95 = arith.constant 0 : index
      %c0_96 = arith.constant 0 : index
      %c0_97 = arith.constant 0 : index
      %233 = vector.load %arg4[%c0_95, %c0_96, %c0_97] : memref<2x8x32xbf16, #tpu.memory_space<vmem>>, vector<1x8x32xbf16>
      %234 = vector.shape_cast %233 : vector<1x8x32xbf16> to vector<8x32xbf16>
      %c0_98 = arith.constant 0 : index
      %c0_99 = arith.constant 0 : index
      %235 = vector.load %arg8[%c0_98, %c0_99] : memref<32x32xbf16, #tpu.memory_space<vmem>>, vector<32x32xbf16>
      %cst_100 = arith.constant dense<0.000000e+00> : vector<8x32xf32>
      %236 = tpu.matmul %234, %235, %cst_100 {dimension_numbers = #tpu.dot_dimension_numbers<[1], [0], [0], [1], [0, 0, 1, 1], [], []>} : vector<8x32xbf16>, vector<32x32xbf16>, vector<8x32xf32> -> vector<8x32xf32>
      %237 = arith.truncf %236 : vector<8x32xf32> to vector<8x32xbf16>
      %c0_101 = arith.constant 0 : index
      %c0_102 = arith.constant 0 : index
      %c0_103 = arith.constant 0 : index
      %238 = vector.load %arg13[%c0_101, %c0_102, %c0_103] : memref<2x8x32xbf16, #tpu.memory_space<vmem>>, vector<1x8x32xbf16>
      %239 = vector.shape_cast %238 : vector<1x8x32xbf16> to vector<8x32xbf16>
      %240 = vector.shape_cast %237 : vector<8x32xbf16> to vector<1x8x32xbf16>
      tpu.vector_store %arg13[%c0_101, %c0_102, %c0_103], %240 {strides = array<i32>} : memref<2x8x32xbf16, #tpu.memory_space<vmem>>, vector<1x8x32xbf16>,
      %c1_104 = arith.constant 1 : index
      %c0_105 = arith.constant 0 : index
      %c0_106 = arith.constant 0 : index
      %241 = vector.load %arg3[%c1_104, %c0_105, %c0_106] : memref<2x8x32xbf16, #tpu.memory_space<vmem>>, vector<1x8x32xbf16>
      %242 = vector.shape_cast %241 : vector<1x8x32xbf16> to vector<8x32xbf16>
      %c0_107 = arith.constant 0 : index
      %c0_108 = arith.constant 0 : index
      %243 = vector.load %arg7[%c0_107, %c0_108] : memref<32x32xbf16, #tpu.memory_space<vmem>>, vector<32x32xbf16>
      %cst_109 = arith.constant dense<0.000000e+00> : vector<8x32xf32>
      %244 = tpu.matmul %242, %243, %cst_109 {dimension_numbers = #tpu.dot_dimension_numbers<[1], [0], [0], [1], [0, 0, 1, 1], [], []>} : vector<8x32xbf16>, vector<32x32xbf16>, vector<8x32xf32> -> vector<8x32xf32>
      %245 = arith.truncf %244 : vector<8x32xf32> to vector<8x32xbf16>
      %c1_110 = arith.constant 1 : index
      %c0_111 = arith.constant 0 : index
      %c0_112 = arith.constant 0 : index
      %246 = vector.load %arg12[%c1_110, %c0_111, %c0_112] : memref<2x8x32xbf16, #tpu.memory_space<vmem>>, vector<1x8x32xbf16>
      %247 = vector.shape_cast %246 : vector<1x8x32xbf16> to vector<8x32xbf16>
      %248 = vector.shape_cast %245 : vector<8x32xbf16> to vector<1x8x32xbf16>
      tpu.vector_store %arg12[%c1_110, %c0_111, %c0_112], %248 {strides = array<i32>} : memref<2x8x32xbf16, #tpu.memory_space<vmem>>, vector<1x8x32xbf16>,
      %c1_113 = arith.constant 1 : index
      %c0_114 = arith.constant 0 : index
      %c0_115 = arith.constant 0 : index
      %249 = vector.load %arg4[%c1_113, %c0_114, %c0_115] : memref<2x8x32xbf16, #tpu.memory_space<vmem>>, vector<1x8x32xbf16>
      %250 = vector.shape_cast %249 : vector<1x8x32xbf16> to vector<8x32xbf16>
      %c0_116 = arith.constant 0 : index
      %c0_117 = arith.constant 0 : index
      %251 = vector.load %arg8[%c0_116, %c0_117] : memref<32x32xbf16, #tpu.memory_space<vmem>>, vector<32x32xbf16>
      %cst_118 = arith.constant dense<0.000000e+00> : vector<8x32xf32>
      %252 = tpu.matmul %250, %251, %cst_118 {dimension_numbers = #tpu.dot_dimension_numbers<[1], [0], [0], [1], [0, 0, 1, 1], [], []>} : vector<8x32xbf16>, vector<32x32xbf16>, vector<8x32xf32> -> vector<8x32xf32>
      %253 = arith.truncf %252 : vector<8x32xf32> to vector<8x32xbf16>
      %c1_119 = arith.constant 1 : index
      %c0_120 = arith.constant 0 : index
      %c0_121 = arith.constant 0 : index
      %254 = vector.load %arg13[%c1_119, %c0_120, %c0_121] : memref<2x8x32xbf16, #tpu.memory_space<vmem>>, vector<1x8x32xbf16>
      %255 = vector.shape_cast %254 : vector<1x8x32xbf16> to vector<8x32xbf16>
      %256 = vector.shape_cast %253 : vector<8x32xbf16> to vector<1x8x32xbf16>
      tpu.vector_store %arg13[%c1_119, %c0_120, %c0_121], %256 {strides = array<i32>} : memref<2x8x32xbf16, #tpu.memory_space<vmem>>, vector<1x8x32xbf16>,
    } else {
    }
    %c0 = arith.constant 0 : index
    %c0_1 = arith.constant 0 : index
    %3 = vector.load %arg6[%c0, %c0_1] : memref<32x32xbf16, #tpu.memory_space<vmem>>, vector<32x32xbf16>
    %c0_2 = arith.constant 0 : index
    %c0_3 = arith.constant 0 : index
    %4 = vector.load %arg9[%c0_2, %c0_3] : memref<32x32xbf16, #tpu.memory_space<vmem>>, vector<32x32xbf16>
    %c0_4 = arith.constant 0 : index
    %c0_5 = arith.constant 0 : index
    %5 = vector.load %arg10[%c0_4, %c0_5] : memref<1x32xf32, #tpu.memory_space<vmem>>, vector<1x32xf32>
    %6 = vector.shape_cast %5 : vector<1x32xf32> to vector<32xf32>
    %c0_6 = arith.constant 0 : index
    %c0_7 = arith.constant 0 : index
    %c0_8 = arith.constant 0 : index
    %7 = vector.load %arg2[%c0_6, %c0_7, %c0_8] : memref<2x8x32xbf16, #tpu.memory_space<vmem>>, vector<1x8x32xbf16>
    %8 = vector.shape_cast %7 : vector<1x8x32xbf16> to vector<8x32xbf16>
    %cst = arith.constant dense<0.000000e+00> : vector<8x32xf32>
    %9 = tpu.matmul %8, %3, %cst {dimension_numbers = #tpu.dot_dimension_numbers<[1], [0], [0], [1], [0, 0, 1, 1], [], []>} : vector<8x32xbf16>, vector<32x32xbf16>, vector<8x32xf32> -> vector<8x32xf32>
    %cst_9 = arith.constant 0.176776692 : f32
    %10 = vector.broadcast %cst_9 : f32 to vector<8x32xf32>
    %11 = arith.mulf %9, %10 : vector<8x32xf32>
    %12 = arith.truncf %11 : vector<8x32xf32> to vector<8x32xbf16>
    %c0_10 = arith.constant 0 : index
    %c0_11 = arith.constant 0 : index
    %c0_12 = arith.constant 0 : index
    %13 = vector.load %arg12[%c0_10, %c0_11, %c0_12] : memref<2x8x32xbf16, #tpu.memory_space<vmem>>, vector<1x8x32xbf16>
    %14 = vector.shape_cast %13 : vector<1x8x32xbf16> to vector<8x32xbf16>
    %c0_13 = arith.constant 0 : index
    %c0_14 = arith.constant 0 : index
    %c0_15 = arith.constant 0 : index
    %15 = vector.load %arg13[%c0_13, %c0_14, %c0_15] : memref<2x8x32xbf16, #tpu.memory_space<vmem>>, vector<1x8x32xbf16>
    %16 = vector.shape_cast %15 : vector<1x8x32xbf16> to vector<8x32xbf16>
    %c0_16 = arith.constant 0 : index
    %c0_17 = arith.constant 0 : index
    %c0_18 = arith.constant 0 : index
    %17 = vector.load %arg5[%c0_16, %c0_17, %c0_18] : memref<2x8x8xi8, #tpu.memory_space<vmem>>, vector<1x8x8xi8>
    %18 = vector.shape_cast %17 : vector<1x8x8xi8> to vector<8x8xi8>
    %19 = arith.extsi %18 : vector<8x8xi8> to vector<8x8xi32>
    %c0_i32_19 = arith.constant 0 : i32
    %20 = vector.broadcast %c0_i32_19 : i32 to vector<8x8xi32>
    %21 = arith.cmpi eq, %19, %20 : vector<8x8xi32>
    %cst_20 = arith.constant -1.000000e+20 : f32
    %cst_21 = arith.constant 0.000000e+00 : f32
    %22 = vector.broadcast %cst_20 : f32 to vector<8x8xf32>
    %23 = vector.broadcast %cst_21 : f32 to vector<8x8xf32>
    %24 = arith.select %21, %22, %23 : vector<8x8xi1>, vector<8x8xf32>
    %cst_22 = arith.constant 0.000000e+00 : f32
    %25 = vector.broadcast %cst_22 : f32 to vector<8x32xf32>
    %26 = vector.extract_strided_slice %12 {offsets = [0, 0], sizes = [8, 8], strides = [1, 1]} : vector<8x32xbf16> to vector<8x8xbf16>
    %27 = vector.extract_strided_slice %14 {offsets = [0, 0], sizes = [8, 8], strides = [1, 1]} : vector<8x32xbf16> to vector<8x8xbf16>
    %cst_23 = arith.constant dense<0.000000e+00> : vector<8x8xf32>
    %28 = tpu.matmul %26, %27, %cst_23 {dimension_numbers = #tpu.dot_dimension_numbers<[1], [1], [0], [0], [0, 0, 1, 0], [], []>} : vector<8x8xbf16>, vector<8x8xbf16>, vector<8x8xf32> -> vector<8x8xf32>
    %29 = arith.addf %28, %24 : vector<8x8xf32>
    %cst_24 = arith.constant dense<0xFF800000> : vector<8xf32>
    %30 = vector.multi_reduction <maximumf>, %29, %cst_24 [1] : vector<8x8xf32> to vector<8xf32>
    %31 = vector.shape_cast %30 : vector<8xf32> to vector<8x1xf32>
    %32 = vector.broadcast %31 : vector<8x1xf32> to vector<8x8xf32>
    %33 = arith.subf %29, %32 : vector<8x8xf32>
    %34 = math.exp %33 : vector<8x8xf32>
    %cst_25 = arith.constant dense<0.000000e+00> : vector<8xf32>
    %35 = vector.multi_reduction <add>, %34, %cst_25 [1] : vector<8x8xf32> to vector<8xf32>
    %36 = vector.shape_cast %35 : vector<8xf32> to vector<8x1xf32>
    %37 = tpu.reciprocal %36 {approx = true} : vector<8x1xf32> -> vector<8x1xf32>
    %38 = vector.broadcast %37 : vector<8x1xf32> to vector<8x8xf32>
    %39 = arith.mulf %34, %38 : vector<8x8xf32>
    %40 = arith.truncf %39 : vector<8x8xf32> to vector<8x8xbf16>
    %41 = vector.extract_strided_slice %16 {offsets = [0, 0], sizes = [8, 8], strides = [1, 1]} : vector<8x32xbf16> to vector<8x8xbf16>
    %cst_26 = arith.constant dense<0.000000e+00> : vector<8x8xf32>
    %42 = tpu.matmul %40, %41, %cst_26 {dimension_numbers = #tpu.dot_dimension_numbers<[1], [0], [0], [1], [0, 0, 1, 1], [], []>} : vector<8x8xbf16>, vector<8x8xbf16>, vector<8x8xf32> -> vector<8x8xf32>
    %43 = arith.truncf %42 : vector<8x8xf32> to vector<8x8xbf16>
    %44 = vector.extract_strided_slice %4 {offsets = [0, 0], sizes = [8, 32], strides = [1, 1]} : vector<32x32xbf16> to vector<8x32xbf16>
    %cst_27 = arith.constant dense<0.000000e+00> : vector<8x32xf32>
    %45 = tpu.matmul %43, %44, %cst_27 {dimension_numbers = #tpu.dot_dimension_numbers<[1], [0], [0], [1], [0, 0, 1, 1], [], []>} : vector<8x8xbf16>, vector<8x32xbf16>, vector<8x32xf32> -> vector<8x32xf32>
    %46 = arith.addf %25, %45 : vector<8x32xf32>
    %47 = vector.extract_strided_slice %12 {offsets = [0, 8], sizes = [8, 8], strides = [1, 1]} : vector<8x32xbf16> to vector<8x8xbf16>
    %48 = vector.extract_strided_slice %14 {offsets = [0, 8], sizes = [8, 8], strides = [1, 1]} : vector<8x32xbf16> to vector<8x8xbf16>
    %cst_28 = arith.constant dense<0.000000e+00> : vector<8x8xf32>
    %49 = tpu.matmul %47, %48, %cst_28 {dimension_numbers = #tpu.dot_dimension_numbers<[1], [1], [0], [0], [0, 0, 1, 0], [], []>} : vector<8x8xbf16>, vector<8x8xbf16>, vector<8x8xf32> -> vector<8x8xf32>
    %50 = arith.addf %49, %24 : vector<8x8xf32>
    %cst_29 = arith.constant dense<0xFF800000> : vector<8xf32>
    %51 = vector.multi_reduction <maximumf>, %50, %cst_29 [1] : vector<8x8xf32> to vector<8xf32>
    %52 = vector.shape_cast %51 : vector<8xf32> to vector<8x1xf32>
    %53 = vector.broadcast %52 : vector<8x1xf32> to vector<8x8xf32>
    %54 = arith.subf %50, %53 : vector<8x8xf32>
    %55 = math.exp %54 : vector<8x8xf32>
    %cst_30 = arith.constant dense<0.000000e+00> : vector<8xf32>
    %56 = vector.multi_reduction <add>, %55, %cst_30 [1] : vector<8x8xf32> to vector<8xf32>
    %57 = vector.shape_cast %56 : vector<8xf32> to vector<8x1xf32>
    %58 = tpu.reciprocal %57 {approx = true} : vector<8x1xf32> -> vector<8x1xf32>
    %59 = vector.broadcast %58 : vector<8x1xf32> to vector<8x8xf32>
    %60 = arith.mulf %55, %59 : vector<8x8xf32>
    %61 = arith.truncf %60 : vector<8x8xf32> to vector<8x8xbf16>
    %62 = vector.extract_strided_slice %16 {offsets = [0, 8], sizes = [8, 8], strides = [1, 1]} : vector<8x32xbf16> to vector<8x8xbf16>
    %cst_31 = arith.constant dense<0.000000e+00> : vector<8x8xf32>
    %63 = tpu.matmul %61, %62, %cst_31 {dimension_numbers = #tpu.dot_dimension_numbers<[1], [0], [0], [1], [0, 0, 1, 1], [], []>} : vector<8x8xbf16>, vector<8x8xbf16>, vector<8x8xf32> -> vector<8x8xf32>
    %64 = arith.truncf %63 : vector<8x8xf32> to vector<8x8xbf16>
    %65 = vector.extract_strided_slice %4 {offsets = [8, 0], sizes = [8, 32], strides = [1, 1]} : vector<32x32xbf16> to vector<8x32xbf16>
    %cst_32 = arith.constant dense<0.000000e+00> : vector<8x32xf32>
    %66 = tpu.matmul %64, %65, %cst_32 {dimension_numbers = #tpu.dot_dimension_numbers<[1], [0], [0], [1], [0, 0, 1, 1], [], []>} : vector<8x8xbf16>, vector<8x32xbf16>, vector<8x32xf32> -> vector<8x32xf32>
    %67 = arith.addf %46, %66 : vector<8x32xf32>
    %68 = vector.extract_strided_slice %12 {offsets = [0, 16], sizes = [8, 8], strides = [1, 1]} : vector<8x32xbf16> to vector<8x8xbf16>
    %69 = vector.extract_strided_slice %14 {offsets = [0, 16], sizes = [8, 8], strides = [1, 1]} : vector<8x32xbf16> to vector<8x8xbf16>
    %cst_33 = arith.constant dense<0.000000e+00> : vector<8x8xf32>
    %70 = tpu.matmul %68, %69, %cst_33 {dimension_numbers = #tpu.dot_dimension_numbers<[1], [1], [0], [0], [0, 0, 1, 0], [], []>} : vector<8x8xbf16>, vector<8x8xbf16>, vector<8x8xf32> -> vector<8x8xf32>
    %71 = arith.addf %70, %24 : vector<8x8xf32>
    %cst_34 = arith.constant dense<0xFF800000> : vector<8xf32>
    %72 = vector.multi_reduction <maximumf>, %71, %cst_34 [1] : vector<8x8xf32> to vector<8xf32>
    %73 = vector.shape_cast %72 : vector<8xf32> to vector<8x1xf32>
    %74 = vector.broadcast %73 : vector<8x1xf32> to vector<8x8xf32>
    %75 = arith.subf %71, %74 : vector<8x8xf32>
    %76 = math.exp %75 : vector<8x8xf32>
    %cst_35 = arith.constant dense<0.000000e+00> : vector<8xf32>
    %77 = vector.multi_reduction <add>, %76, %cst_35 [1] : vector<8x8xf32> to vector<8xf32>
    %78 = vector.shape_cast %77 : vector<8xf32> to vector<8x1xf32>
    %79 = tpu.reciprocal %78 {approx = true} : vector<8x1xf32> -> vector<8x1xf32>
    %80 = vector.broadcast %79 : vector<8x1xf32> to vector<8x8xf32>
    %81 = arith.mulf %76, %80 : vector<8x8xf32>
    %82 = arith.truncf %81 : vector<8x8xf32> to vector<8x8xbf16>
    %83 = vector.extract_strided_slice %16 {offsets = [0, 16], sizes = [8, 8], strides = [1, 1]} : vector<8x32xbf16> to vector<8x8xbf16>
    %cst_36 = arith.constant dense<0.000000e+00> : vector<8x8xf32>
    %84 = tpu.matmul %82, %83, %cst_36 {dimension_numbers = #tpu.dot_dimension_numbers<[1], [0], [0], [1], [0, 0, 1, 1], [], []>} : vector<8x8xbf16>, vector<8x8xbf16>, vector<8x8xf32> -> vector<8x8xf32>
    %85 = arith.truncf %84 : vector<8x8xf32> to vector<8x8xbf16>
    %86 = vector.extract_strided_slice %4 {offsets = [16, 0], sizes = [8, 32], strides = [1, 1]} : vector<32x32xbf16> to vector<8x32xbf16>
    %cst_37 = arith.constant dense<0.000000e+00> : vector<8x32xf32>
    %87 = tpu.matmul %85, %86, %cst_37 {dimension_numbers = #tpu.dot_dimension_numbers<[1], [0], [0], [1], [0, 0, 1, 1], [], []>} : vector<8x8xbf16>, vector<8x32xbf16>, vector<8x32xf32> -> vector<8x32xf32>
    %88 = arith.addf %67, %87 : vector<8x32xf32>
    %89 = vector.extract_strided_slice %12 {offsets = [0, 24], sizes = [8, 8], strides = [1, 1]} : vector<8x32xbf16> to vector<8x8xbf16>
    %90 = vector.extract_strided_slice %14 {offsets = [0, 24], sizes = [8, 8], strides = [1, 1]} : vector<8x32xbf16> to vector<8x8xbf16>
    %cst_38 = arith.constant dense<0.000000e+00> : vector<8x8xf32>
    %91 = tpu.matmul %89, %90, %cst_38 {dimension_numbers = #tpu.dot_dimension_numbers<[1], [1], [0], [0], [0, 0, 1, 0], [], []>} : vector<8x8xbf16>, vector<8x8xbf16>, vector<8x8xf32> -> vector<8x8xf32>
    %92 = arith.addf %91, %24 : vector<8x8xf32>
    %cst_39 = arith.constant dense<0xFF800000> : vector<8xf32>
    %93 = vector.multi_reduction <maximumf>, %92, %cst_39 [1] : vector<8x8xf32> to vector<8xf32>
    %94 = vector.shape_cast %93 : vector<8xf32> to vector<8x1xf32>
    %95 = vector.broadcast %94 : vector<8x1xf32> to vector<8x8xf32>
    %96 = arith.subf %92, %95 : vector<8x8xf32>
    %97 = math.exp %96 : vector<8x8xf32>
    %cst_40 = arith.constant dense<0.000000e+00> : vector<8xf32>
    %98 = vector.multi_reduction <add>, %97, %cst_40 [1] : vector<8x8xf32> to vector<8xf32>
    %99 = vector.shape_cast %98 : vector<8xf32> to vector<8x1xf32>
    %100 = tpu.reciprocal %99 {approx = true} : vector<8x1xf32> -> vector<8x1xf32>
    %101 = vector.broadcast %100 : vector<8x1xf32> to vector<8x8xf32>
    %102 = arith.mulf %97, %101 : vector<8x8xf32>
    %103 = arith.truncf %102 : vector<8x8xf32> to vector<8x8xbf16>
    %104 = vector.extract_strided_slice %16 {offsets = [0, 24], sizes = [8, 8], strides = [1, 1]} : vector<8x32xbf16> to vector<8x8xbf16>
    %cst_41 = arith.constant dense<0.000000e+00> : vector<8x8xf32>
    %105 = tpu.matmul %103, %104, %cst_41 {dimension_numbers = #tpu.dot_dimension_numbers<[1], [0], [0], [1], [0, 0, 1, 1], [], []>} : vector<8x8xbf16>, vector<8x8xbf16>, vector<8x8xf32> -> vector<8x8xf32>
    %106 = arith.truncf %105 : vector<8x8xf32> to vector<8x8xbf16>
    %107 = vector.extract_strided_slice %4 {offsets = [24, 0], sizes = [8, 32], strides = [1, 1]} : vector<32x32xbf16> to vector<8x32xbf16>
    %cst_42 = arith.constant dense<0.000000e+00> : vector<8x32xf32>
    %108 = tpu.matmul %106, %107, %cst_42 {dimension_numbers = #tpu.dot_dimension_numbers<[1], [0], [0], [1], [0, 0, 1, 1], [], []>} : vector<8x8xbf16>, vector<8x32xbf16>, vector<8x32xf32> -> vector<8x32xf32>
    %109 = arith.addf %88, %108 : vector<8x32xf32>
    %110 = vector.shape_cast %6 : vector<32xf32> to vector<1x32xf32>
    %111 = vector.broadcast %110 : vector<1x32xf32> to vector<8x32xf32>
    %112 = arith.addf %109, %111 : vector<8x32xf32>
    %c0_43 = arith.constant 0 : index
    %c0_44 = arith.constant 0 : index
    %c0_45 = arith.constant 0 : index
    %113 = vector.load %arg11[%c0_43, %c0_44, %c0_45] : memref<2x8x32xf32, #tpu.memory_space<vmem>>, vector<1x8x32xf32>
    %114 = vector.shape_cast %113 : vector<1x8x32xf32> to vector<8x32xf32>
    %115 = vector.shape_cast %112 : vector<8x32xf32> to vector<1x8x32xf32>
    tpu.vector_store %arg11[%c0_43, %c0_44, %c0_45], %115 {strides = array<i32>} : memref<2x8x32xf32, #tpu.memory_space<vmem>>, vector<1x8x32xf32>,
    %c1 = arith.constant 1 : index
    %c0_46 = arith.constant 0 : index
    %c0_47 = arith.constant 0 : index
    %116 = vector.load %arg2[%c1, %c0_46, %c0_47] : memref<2x8x32xbf16, #tpu.memory_space<vmem>>, vector<1x8x32xbf16>
    %117 = vector.shape_cast %116 : vector<1x8x32xbf16> to vector<8x32xbf16>
    %cst_48 = arith.constant dense<0.000000e+00> : vector<8x32xf32>
    %118 = tpu.matmul %117, %3, %cst_48 {dimension_numbers = #tpu.dot_dimension_numbers<[1], [0], [0], [1], [0, 0, 1, 1], [], []>} : vector<8x32xbf16>, vector<32x32xbf16>, vector<8x32xf32> -> vector<8x32xf32>
    %cst_49 = arith.constant 0.176776692 : f32
    %119 = vector.broadcast %cst_49 : f32 to vector<8x32xf32>
    %120 = arith.mulf %118, %119 : vector<8x32xf32>
    %121 = arith.truncf %120 : vector<8x32xf32> to vector<8x32xbf16>
    %c1_50 = arith.constant 1 : index
    %c0_51 = arith.constant 0 : index
    %c0_52 = arith.constant 0 : index
    %122 = vector.load %arg12[%c1_50, %c0_51, %c0_52] : memref<2x8x32xbf16, #tpu.memory_space<vmem>>, vector<1x8x32xbf16>
    %123 = vector.shape_cast %122 : vector<1x8x32xbf16> to vector<8x32xbf16>
    %c1_53 = arith.constant 1 : index
    %c0_54 = arith.constant 0 : index
    %c0_55 = arith.constant 0 : index
    %124 = vector.load %arg13[%c1_53, %c0_54, %c0_55] : memref<2x8x32xbf16, #tpu.memory_space<vmem>>, vector<1x8x32xbf16>
    %125 = vector.shape_cast %124 : vector<1x8x32xbf16> to vector<8x32xbf16>
    %c1_56 = arith.constant 1 : index
    %c0_57 = arith.constant 0 : index
    %c0_58 = arith.constant 0 : index
    %126 = vector.load %arg5[%c1_56, %c0_57, %c0_58] : memref<2x8x8xi8, #tpu.memory_space<vmem>>, vector<1x8x8xi8>
    %127 = vector.shape_cast %126 : vector<1x8x8xi8> to vector<8x8xi8>
    %128 = arith.extsi %127 : vector<8x8xi8> to vector<8x8xi32>
    %c0_i32_59 = arith.constant 0 : i32
    %129 = vector.broadcast %c0_i32_59 : i32 to vector<8x8xi32>
    %130 = arith.cmpi eq, %128, %129 : vector<8x8xi32>
    %cst_60 = arith.constant -1.000000e+20 : f32
    %cst_61 = arith.constant 0.000000e+00 : f32
    %131 = vector.broadcast %cst_60 : f32 to vector<8x8xf32>
    %132 = vector.broadcast %cst_61 : f32 to vector<8x8xf32>
    %133 = arith.select %130, %131, %132 : vector<8x8xi1>, vector<8x8xf32>
    %cst_62 = arith.constant 0.000000e+00 : f32
    %134 = vector.broadcast %cst_62 : f32 to vector<8x32xf32>
    %135 = vector.extract_strided_slice %121 {offsets = [0, 0], sizes = [8, 8], strides = [1, 1]} : vector<8x32xbf16> to vector<8x8xbf16>
    %136 = vector.extract_strided_slice %123 {offsets = [0, 0], sizes = [8, 8], strides = [1, 1]} : vector<8x32xbf16> to vector<8x8xbf16>
    %cst_63 = arith.constant dense<0.000000e+00> : vector<8x8xf32>
    %137 = tpu.matmul %135, %136, %cst_63 {dimension_numbers = #tpu.dot_dimension_numbers<[1], [1], [0], [0], [0, 0, 1, 0], [], []>} : vector<8x8xbf16>, vector<8x8xbf16>, vector<8x8xf32> -> vector<8x8xf32>
    %138 = arith.addf %137, %133 : vector<8x8xf32>
    %cst_64 = arith.constant dense<0xFF800000> : vector<8xf32>
    %139 = vector.multi_reduction <maximumf>, %138, %cst_64 [1] : vector<8x8xf32> to vector<8xf32>
    %140 = vector.shape_cast %139 : vector<8xf32> to vector<8x1xf32>
    %141 = vector.broadcast %140 : vector<8x1xf32> to vector<8x8xf32>
    %142 = arith.subf %138, %141 : vector<8x8xf32>
    %143 = math.exp %142 : vector<8x8xf32>
    %cst_65 = arith.constant dense<0.000000e+00> : vector<8xf32>
    %144 = vector.multi_reduction <add>, %143, %cst_65 [1] : vector<8x8xf32> to vector<8xf32>
    %145 = vector.shape_cast %144 : vector<8xf32> to vector<8x1xf32>
    %146 = tpu.reciprocal %145 {approx = true} : vector<8x1xf32> -> vector<8x1xf32>
    %147 = vector.broadcast %146 : vector<8x1xf32> to vector<8x8xf32>
    %148 = arith.mulf %143, %147 : vector<8x8xf32>
    %149 = arith.truncf %148 : vector<8x8xf32> to vector<8x8xbf16>
    %150 = vector.extract_strided_slice %125 {offsets = [0, 0], sizes = [8, 8], strides = [1, 1]} : vector<8x32xbf16> to vector<8x8xbf16>
    %cst_66 = arith.constant dense<0.000000e+00> : vector<8x8xf32>
    %151 = tpu.matmul %149, %150, %cst_66 {dimension_numbers = #tpu.dot_dimension_numbers<[1], [0], [0], [1], [0, 0, 1, 1], [], []>} : vector<8x8xbf16>, vector<8x8xbf16>, vector<8x8xf32> -> vector<8x8xf32>
    %152 = arith.truncf %151 : vector<8x8xf32> to vector<8x8xbf16>
    %153 = vector.extract_strided_slice %4 {offsets = [0, 0], sizes = [8, 32], strides = [1, 1]} : vector<32x32xbf16> to vector<8x32xbf16>
    %cst_67 = arith.constant dense<0.000000e+00> : vector<8x32xf32>
    %154 = tpu.matmul %152, %153, %cst_67 {dimension_numbers = #tpu.dot_dimension_numbers<[1], [0], [0], [1], [0, 0, 1, 1], [], []>} : vector<8x8xbf16>, vector<8x32xbf16>, vector<8x32xf32> -> vector<8x32xf32>
    %155 = arith.addf %134, %154 : vector<8x32xf32>
    %156 = vector.extract_strided_slice %121 {offsets = [0, 8], sizes = [8, 8], strides = [1, 1]} : vector<8x32xbf16> to vector<8x8xbf16>
    %157 = vector.extract_strided_slice %123 {offsets = [0, 8], sizes = [8, 8], strides = [1, 1]} : vector<8x32xbf16> to vector<8x8xbf16>
    %cst_68 = arith.constant dense<0.000000e+00> : vector<8x8xf32>
    %158 = tpu.matmul %156, %157, %cst_68 {dimension_numbers = #tpu.dot_dimension_numbers<[1], [1], [0], [0], [0, 0, 1, 0], [], []>} : vector<8x8xbf16>, vector<8x8xbf16>, vector<8x8xf32> -> vector<8x8xf32>
    %159 = arith.addf %158, %133 : vector<8x8xf32>
    %cst_69 = arith.constant dense<0xFF800000> : vector<8xf32>
    %160 = vector.multi_reduction <maximumf>, %159, %cst_69 [1] : vector<8x8xf32> to vector<8xf32>
    %161 = vector.shape_cast %160 : vector<8xf32> to vector<8x1xf32>
    %162 = vector.broadcast %161 : vector<8x1xf32> to vector<8x8xf32>
    %163 = arith.subf %159, %162 : vector<8x8xf32>
    %164 = math.exp %163 : vector<8x8xf32>
    %cst_70 = arith.constant dense<0.000000e+00> : vector<8xf32>
    %165 = vector.multi_reduction <add>, %164, %cst_70 [1] : vector<8x8xf32> to vector<8xf32>
    %166 = vector.shape_cast %165 : vector<8xf32> to vector<8x1xf32>
    %167 = tpu.reciprocal %166 {approx = true} : vector<8x1xf32> -> vector<8x1xf32>
    %168 = vector.broadcast %167 : vector<8x1xf32> to vector<8x8xf32>
    %169 = arith.mulf %164, %168 : vector<8x8xf32>
    %170 = arith.truncf %169 : vector<8x8xf32> to vector<8x8xbf16>
    %171 = vector.extract_strided_slice %125 {offsets = [0, 8], sizes = [8, 8], strides = [1, 1]} : vector<8x32xbf16> to vector<8x8xbf16>
    %cst_71 = arith.constant dense<0.000000e+00> : vector<8x8xf32>
    %172 = tpu.matmul %170, %171, %cst_71 {dimension_numbers = #tpu.dot_dimension_numbers<[1], [0], [0], [1], [0, 0, 1, 1], [], []>} : vector<8x8xbf16>, vector<8x8xbf16>, vector<8x8xf32> -> vector<8x8xf32>
    %173 = arith.truncf %172 : vector<8x8xf32> to vector<8x8xbf16>
    %174 = vector.extract_strided_slice %4 {offsets = [8, 0], sizes = [8, 32], strides = [1, 1]} : vector<32x32xbf16> to vector<8x32xbf16>
    %cst_72 = arith.constant dense<0.000000e+00> : vector<8x32xf32>
    %175 = tpu.matmul %173, %174, %cst_72 {dimension_numbers = #tpu.dot_dimension_numbers<[1], [0], [0], [1], [0, 0, 1, 1], [], []>} : vector<8x8xbf16>, vector<8x32xbf16>, vector<8x32xf32> -> vector<8x32xf32>
    %176 = arith.addf %155, %175 : vector<8x32xf32>
    %177 = vector.extract_strided_slice %121 {offsets = [0, 16], sizes = [8, 8], strides = [1, 1]} : vector<8x32xbf16> to vector<8x8xbf16>
    %178 = vector.extract_strided_slice %123 {offsets = [0, 16], sizes = [8, 8], strides = [1, 1]} : vector<8x32xbf16> to vector<8x8xbf16>
    %cst_73 = arith.constant dense<0.000000e+00> : vector<8x8xf32>
    %179 = tpu.matmul %177, %178, %cst_73 {dimension_numbers = #tpu.dot_dimension_numbers<[1], [1], [0], [0], [0, 0, 1, 0], [], []>} : vector<8x8xbf16>, vector<8x8xbf16>, vector<8x8xf32> -> vector<8x8xf32>
    %180 = arith.addf %179, %133 : vector<8x8xf32>
    %cst_74 = arith.constant dense<0xFF800000> : vector<8xf32>
    %181 = vector.multi_reduction <maximumf>, %180, %cst_74 [1] : vector<8x8xf32> to vector<8xf32>
    %182 = vector.shape_cast %181 : vector<8xf32> to vector<8x1xf32>
    %183 = vector.broadcast %182 : vector<8x1xf32> to vector<8x8xf32>
    %184 = arith.subf %180, %183 : vector<8x8xf32>
    %185 = math.exp %184 : vector<8x8xf32>
    %cst_75 = arith.constant dense<0.000000e+00> : vector<8xf32>
    %186 = vector.multi_reduction <add>, %185, %cst_75 [1] : vector<8x8xf32> to vector<8xf32>
    %187 = vector.shape_cast %186 : vector<8xf32> to vector<8x1xf32>
    %188 = tpu.reciprocal %187 {approx = true} : vector<8x1xf32> -> vector<8x1xf32>
    %189 = vector.broadcast %188 : vector<8x1xf32> to vector<8x8xf32>
    %190 = arith.mulf %185, %189 : vector<8x8xf32>
    %191 = arith.truncf %190 : vector<8x8xf32> to vector<8x8xbf16>
    %192 = vector.extract_strided_slice %125 {offsets = [0, 16], sizes = [8, 8], strides = [1, 1]} : vector<8x32xbf16> to vector<8x8xbf16>
    %cst_76 = arith.constant dense<0.000000e+00> : vector<8x8xf32>
    %193 = tpu.matmul %191, %192, %cst_76 {dimension_numbers = #tpu.dot_dimension_numbers<[1], [0], [0], [1], [0, 0, 1, 1], [], []>} : vector<8x8xbf16>, vector<8x8xbf16>, vector<8x8xf32> -> vector<8x8xf32>
    %194 = arith.truncf %193 : vector<8x8xf32> to vector<8x8xbf16>
    %195 = vector.extract_strided_slice %4 {offsets = [16, 0], sizes = [8, 32], strides = [1, 1]} : vector<32x32xbf16> to vector<8x32xbf16>
    %cst_77 = arith.constant dense<0.000000e+00> : vector<8x32xf32>
    %196 = tpu.matmul %194, %195, %cst_77 {dimension_numbers = #tpu.dot_dimension_numbers<[1], [0], [0], [1], [0, 0, 1, 1], [], []>} : vector<8x8xbf16>, vector<8x32xbf16>, vector<8x32xf32> -> vector<8x32xf32>
    %197 = arith.addf %176, %196 : vector<8x32xf32>
    %198 = vector.extract_strided_slice %121 {offsets = [0, 24], sizes = [8, 8], strides = [1, 1]} : vector<8x32xbf16> to vector<8x8xbf16>
    %199 = vector.extract_strided_slice %123 {offsets = [0, 24], sizes = [8, 8], strides = [1, 1]} : vector<8x32xbf16> to vector<8x8xbf16>
    %cst_78 = arith.constant dense<0.000000e+00> : vector<8x8xf32>
    %200 = tpu.matmul %198, %199, %cst_78 {dimension_numbers = #tpu.dot_dimension_numbers<[1], [1], [0], [0], [0, 0, 1, 0], [], []>} : vector<8x8xbf16>, vector<8x8xbf16>, vector<8x8xf32> -> vector<8x8xf32>
    %201 = arith.addf %200, %133 : vector<8x8xf32>
    %cst_79 = arith.constant dense<0xFF800000> : vector<8xf32>
    %202 = vector.multi_reduction <maximumf>, %201, %cst_79 [1] : vector<8x8xf32> to vector<8xf32>
    %203 = vector.shape_cast %202 : vector<8xf32> to vector<8x1xf32>
    %204 = vector.broadcast %203 : vector<8x1xf32> to vector<8x8xf32>
    %205 = arith.subf %201, %204 : vector<8x8xf32>
    %206 = math.exp %205 : vector<8x8xf32>
    %cst_80 = arith.constant dense<0.000000e+00> : vector<8xf32>
    %207 = vector.multi_reduction <add>, %206, %cst_80 [1] : vector<8x8xf32> to vector<8xf32>
    %208 = vector.shape_cast %207 : vector<8xf32> to vector<8x1xf32>
    %209 = tpu.reciprocal %208 {approx = true} : vector<8x1xf32> -> vector<8x1xf32>
    %210 = vector.broadcast %209 : vector<8x1xf32> to vector<8x8xf32>
    %211 = arith.mulf %206, %210 : vector<8x8xf32>
    %212 = arith.truncf %211 : vector<8x8xf32> to vector<8x8xbf16>
    %213 = vector.extract_strided_slice %125 {offsets = [0, 24], sizes = [8, 8], strides = [1, 1]} : vector<8x32xbf16> to vector<8x8xbf16>
    %cst_81 = arith.constant dense<0.000000e+00> : vector<8x8xf32>
    %214 = tpu.matmul %212, %213, %cst_81 {dimension_numbers = #tpu.dot_dimension_numbers<[1], [0], [0], [1], [0, 0, 1, 1], [], []>} : vector<8x8xbf16>, vector<8x8xbf16>, vector<8x8xf32> -> vector<8x8xf32>
    %215 = arith.truncf %214 : vector<8x8xf32> to vector<8x8xbf16>
    %216 = vector.extract_strided_slice %4 {offsets = [24, 0], sizes = [8, 32], strides = [1, 1]} : vector<32x32xbf16> to vector<8x32xbf16>
    %cst_82 = arith.constant dense<0.000000e+00> : vector<8x32xf32>
    %217 = tpu.matmul %215, %216, %cst_82 {dimension_numbers = #tpu.dot_dimension_numbers<[1], [0], [0], [1], [0, 0, 1, 1], [], []>} : vector<8x8xbf16>, vector<8x32xbf16>, vector<8x32xf32> -> vector<8x32xf32>
    %218 = arith.addf %197, %217 : vector<8x32xf32>
    %219 = vector.shape_cast %6 : vector<32xf32> to vector<1x32xf32>
    %220 = vector.broadcast %219 : vector<1x32xf32> to vector<8x32xf32>
    %221 = arith.addf %218, %220 : vector<8x32xf32>
    %c1_83 = arith.constant 1 : index
    %c0_84 = arith.constant 0 : index
    %c0_85 = arith.constant 0 : index
    %222 = vector.load %arg11[%c1_83, %c0_84, %c0_85] : memref<2x8x32xf32, #tpu.memory_space<vmem>>, vector<1x8x32xf32>
    %223 = vector.shape_cast %222 : vector<1x8x32xf32> to vector<8x32xf32>
    %224 = vector.shape_cast %221 : vector<8x32xf32> to vector<1x8x32xf32>
    tpu.vector_store %arg11[%c1_83, %c0_84, %c0_85], %224 {strides = array<i32>} : memref<2x8x32xf32, #tpu.memory_space<vmem>>, vector<1x8x32xf32>,
    return
  }
  func.func @transform_0(%arg0: i32, %arg1: i32) -> (i32, i32, i32) {
    %c0_i32 = arith.constant 0 : i32
    %c0_i32_0 = arith.constant 0 : i32
    return %arg0, %arg1, %c0_i32 : i32, i32, i32
  }
  func.func @transform_1(%arg0: i32, %arg1: i32) -> (i32, i32, i32) {
    %c0_i32 = arith.constant 0 : i32
    %c0_i32_0 = arith.constant 0 : i32
    %c0_i32_1 = arith.constant 0 : i32
    return %arg0, %c0_i32, %c0_i32_0 : i32, i32, i32
  }
  func.func @transform_2(%arg0: i32, %arg1: i32) -> (i32, i32, i32) {
    %c0_i32 = arith.constant 0 : i32
    %c0_i32_0 = arith.constant 0 : i32
    %c0_i32_1 = arith.constant 0 : i32
    return %arg0, %c0_i32, %c0_i32_0 : i32, i32, i32
  }
  func.func @transform_3(%arg0: i32, %arg1: i32) -> (i32, i32, i32) {
    %c0_i32 = arith.constant 0 : i32
    %c0_i32_0 = arith.constant 0 : i32
    return %arg0, %arg1, %c0_i32 : i32, i32, i32
  }
  func.func @transform_4(%arg0: i32, %arg1: i32) -> (i32, i32) {
    %c0_i32 = arith.constant 0 : i32
    %c0_i32_0 = arith.constant 0 : i32
    %c0_i32_1 = arith.constant 0 : i32
    return %c0_i32, %c0_i32_0 : i32, i32
  }
  func.func @transform_5(%arg0: i32, %arg1: i32) -> (i32, i32) {
    %c0_i32 = arith.constant 0 : i32
    %c0_i32_0 = arith.constant 0 : i32
    %c0_i32_1 = arith.constant 0 : i32
    return %c0_i32, %c0_i32_0 : i32, i32
  }
  func.func @transform_6(%arg0: i32, %arg1: i32) -> (i32, i32) {
    %c0_i32 = arith.constant 0 : i32
    %c0_i32_0 = arith.constant 0 : i32
    %c0_i32_1 = arith.constant 0 : i32
    return %c0_i32, %c0_i32_0 : i32, i32
  }
  func.func @transform_7(%arg0: i32, %arg1: i32) -> (i32, i32) {
    %c0_i32 = arith.constant 0 : i32
    %c0_i32_0 = arith.constant 0 : i32
    %c0_i32_1 = arith.constant 0 : i32
    return %c0_i32, %c0_i32_0 : i32, i32
  }
  func.func @transform_8(%arg0: i32, %arg1: i32) -> (i32, i32) {
    %c0_i32 = arith.constant 0 : i32
    %c0_i32_0 = arith.constant 0 : i32
    %c0_i32_1 = arith.constant 0 : i32
    return %c0_i32, %c0_i32_0 : i32, i32
  }
  func.func @transform_9(%arg0: i32, %arg1: i32) -> (i32, i32, i32) {
    %c0_i32 = arith.constant 0 : i32
    %c0_i32_0 = arith.constant 0 : i32
    return %arg0, %arg1, %c0_i32 : i32, i32, i32
  }
}

</mosaic_0001>

<bundles_post_ra>
// kernel: tpu_custom_call.1
= control target key start
LH: loop header
LB: loop body
LE: loop exit
PB: predicated region body
PF: predicated region fallthrough
CT: control target
= control target key end

     0   :  { %14 = vsyncpa [#allocation5], 0  ;;  %s2735_s0 = inlined_call_operand.hbm [shape: bf16[2,8,32], index: 0, kind: input, shape index: {}]   ;;  %s2736_s1 = inlined_call_operand.hbm [shape: bf16[2,8,32], index: 1, kind: input, shape index: {}]   ;;  %s2737_s2 = inlined_call_operand.hbm [shape: bf16[2,8,32], index: 2, kind: input, shape index: {}]   ;;  %s2738_s3 = inlined_call_operand.vmem [shape: s8[2,8,8], index: 3, kind: input, shape index: {}]   ;;  %s2739_s4 = inlined_call_operand.hbm [shape: bf16[32,32], index: 4, kind: input, shape index: {}]   ;;  %s2740_s5 = inlined_call_operand.hbm [shape: bf16[32,32], index: 5, kind: input, shape index: {}]   ;;  %s2741_s6 = inlined_call_operand.hbm [shape: bf16[32,32], index: 6, kind: input, shape index: {}]   ;;  %s2742_s7 = inlined_call_operand.hbm [shape: bf16[32,32], index: 7, kind: input, shape index: {}]   ;;  %s2743_s8 = inlined_call_operand.vmem [shape: f32[1,32], index: 8, kind: input, shape index: {}]   ;;  %s2744_s9 = inlined_call_operand.hbm [shape: f32[2,8,32], index: 9, kind: output, shape index: {}]  }
   0x1   :  { %15 = vsyncpa [#allocation8], 0 }
   0x2   :  { %16 = vsyncpa [#allocation11], 0 }
   0x3   :  { %17 = vsyncpa [#allocation14], 0 }
   0x4   :  { %18 = vsyncpa [#allocation6], 0  ;;  %s2336_s30 = smov [#allocation7]   ;;  %s2337_s11 = smov [#allocation10]  }
   0x5   :  { %s36_s10 = sshll.u32 %s2336_s30, 4  ;;  %s62_s12 = sshll.u32 %s2337_s11, 4  ;;  %s37_s10 = int_to_ptr.vmem [resolvable:$true] %s36_s10  ;;  %s63_s12 = int_to_ptr.vmem [resolvable:$true] %s62_s12 }
   0x6   :  { %s2174_s13 = scalar_lea.vmem %s37_s10, 128  ;;  %p2179_p1 = scmp.lt.s32.totalorder %s37_s10, %s37_s10 }
   0x7   :  { %p2175_p0 = scmp.ne.s32.totalorder %s37_s10, %s2174_s13  ;;  %p2180_p2 = scmp.lt.s32.totalorder %s2174_s13, %s2174_s13 }
   0x9   :  { %p2181_p3 = por %p2180_p2, %p2179_p1 }
   0xb   :  { %p2182_p4 = pnand %p2181_p3, %p2175_p0 }
   0xd   :  { %2185 = shalt.err (!%p2182_p4)
}
   0xe   :  { %s2338_s14 = smov 64   ;;  %s2339_s15 = smov 4  }
   0xf   :  { %42 = dma.hbm_to_vmem [thread:$0]  %s2736_s1, 128, %s37_s10, [#allocation8], %s2338_s14, %s2338_s14, %s2339_s15  }
  0x10   :  { %s2194_s18 = scalar_lea.vmem %s63_s12, 256  ;;  %p2199_p6 = scmp.lt.s32.totalorder %s63_s12, %s63_s12 }
  0x11   :  { %p2195_p5 = scmp.ne.s32.totalorder %s63_s12, %s2194_s18  ;;  %p2200_p7 = scmp.lt.s32.totalorder %s2194_s18, %s2194_s18 }
  0x13   :  { %p2201_p8 = por %p2200_p7, %p2199_p6 }
  0x15   :  { %p2202_p9 = pnand %p2201_p8, %p2195_p5 }
  0x17   :  { %2205 = shalt.err (!%p2202_p9)
}
  0x18   :  { %68 = dma.hbm_to_vmem [thread:$0]  %s2739_s4, 256, %s63_s12, [#allocation11], %s2338_s14, %s2338_s14, %s2339_s15  }
  0x19   :  { %s2340_s21 = smov [#allocation13]   ;;  %s2341_s23 = smov [#allocation4]  }
  0x1a   :  { %s86_s22 = sshll.u32 %s2340_s21, 4  ;;  %s24_s24 = sshll.u32 %s2341_s23, 4  ;;  %s87_s22 = int_to_ptr.vmem [resolvable:$true] %s86_s22  ;;  %s25_s24 = int_to_ptr.vmem [resolvable:$true] %s24_s24 }
  0x1b   :  { %s2214_s1 = scalar_lea.vmem %s87_s22, 256  ;;  %p2219_p11 = scmp.lt.s32.totalorder %s87_s22, %s87_s22 }
  0x1c   :  { %p2215_p10 = scmp.ne.s32.totalorder %s87_s22, %s2214_s1  ;;  %p2220_p12 = scmp.lt.s32.totalorder %s2214_s1, %s2214_s1 }
  0x1e   :  { %p2221_p13 = por %p2220_p12, %p2219_p11 }
  0x20   :  { %p2222_p0 = pnand %p2221_p13, %p2215_p10 }
  0x22   :  { %2225 = shalt.err (!%p2222_p0)
}
  0x23   :  { %92 = dma.hbm_to_vmem [thread:$0]  %s2741_s6, 256, %s87_s22, [#allocation14], %s2338_s14, %s2338_s14, %s2339_s15  }
  0x24   :  { %s2234_s4 = scalar_lea.vmem %s25_s24, 128  ;;  %p2239_p2 = scmp.lt.s32.totalorder %s25_s24, %s25_s24 }
  0x25   :  { %p2235_p1 = scmp.ne.s32.totalorder %s25_s24, %s2234_s4  ;;  %p2240_p3 = scmp.lt.s32.totalorder %s2234_s4, %s2234_s4 }
  0x27   :  { %p2241_p4 = por %p2240_p3, %p2239_p2 }
  0x29   :  { %p2242_p5 = pnand %p2241_p4, %p2235_p1 }
  0x2b   :  { %2245 = shalt.err (!%p2242_p5)
}
  0x2c   :  { %30 = dma.hbm_to_vmem [thread:$0]  %s2735_s0, 128, %s25_s24, [#allocation5], %s2338_s14, %s2338_s14, %s2339_s15  }
  0x2d   :  { %s2342_s29 = smov [#allocation9]   ;;  %s2343_s10 = smov [#allocation12]  }
  0x2e   :  { %s48_s30 = sshll.u32 %s2342_s29, 4  ;;  %s74_s11 = sshll.u32 %s2343_s10, 4  ;;  %s49_s30 = int_to_ptr.vmem [resolvable:$true] %s48_s30  ;;  %s75_s11 = int_to_ptr.vmem [resolvable:$true] %s74_s11 }
  0x2f   :  { %s2254_s6 = scalar_lea.vmem %s49_s30, 128  ;;  %p2259_p7 = scmp.lt.s32.totalorder %s49_s30, %s49_s30 }
  0x30   :  { %p2255_p6 = scmp.ne.s32.totalorder %s49_s30, %s2254_s6  ;;  %p2260_p8 = scmp.lt.s32.totalorder %s2254_s6, %s2254_s6 }
  0x32   :  { %p2261_p9 = por %p2260_p8, %p2259_p7 }
  0x34   :  { %p2262_p10 = pnand %p2261_p9, %p2255_p6 }
  0x36   :  { %2265 = shalt.err (!%p2262_p10)
}
  0x37   :  { %54 = dma.hbm_to_vmem [thread:$0]  %s2737_s2, 128, %s49_s30, [#allocation8], %s2338_s14, %s2338_s14, %s2339_s15  }
  0x38   :  { %s2274_s0 = scalar_lea.vmem %s75_s11, 256  ;;  %p2279_p12 = scmp.lt.s32.totalorder %s75_s11, %s75_s11 }
  0x39   :  { %p2275_p11 = scmp.ne.s32.totalorder %s75_s11, %s2274_s0  ;;  %p2280_p13 = scmp.lt.s32.totalorder %s2274_s0, %s2274_s0 }
  0x3b   :  { %p2281_p0 = por %p2280_p13, %p2279_p12 }
  0x3d   :  { %p2282_p1 = pnand %p2281_p0, %p2275_p11 }
  0x3f   :  { %2285 = shalt.err (!%p2282_p1)
}
  0x40   :  { %80 = dma.hbm_to_vmem [thread:$0]  %s2740_s5, 256, %s75_s11, [#allocation11], %s2338_s14, %s2338_s14, %s2339_s15  }
  0x41   :  { %s2344_s18 = smov [#allocation15]  }
  0x42   :  { %s98_s19 = sshll.u32 %s2344_s18, 4  ;;  %s99_s19 = int_to_ptr.vmem [resolvable:$true] %s98_s19 }
  0x43   :  { %s2294_s20 = scalar_lea.vmem %s99_s19, 256  ;;  %p2299_p3 = scmp.lt.s32.totalorder %s99_s19, %s99_s19 }
  0x44   :  { %p2295_p2 = scmp.ne.s32.totalorder %s99_s19, %s2294_s20  ;;  %p2300_p4 = scmp.lt.s32.totalorder %s2294_s20, %s2294_s20 }
  0x46   :  { %p2301_p5 = por %p2300_p4, %p2299_p3 }
  0x48   :  { %p2302_p6 = pnand %p2301_p5, %p2295_p2 }
  0x4a   :  { %2305 = shalt.err (!%p2302_p6)
}
  0x4b   :  { %104 = dma.hbm_to_vmem [thread:$0]  %s2742_s7, 256, %s99_s19, [#allocation14], %s2338_s14, %s2338_s14, %s2339_s15  }
  0x4c   :  { %2326 = dma.done.wait [#allocation5], 128  }
  0x4d   :  { %2327 = vsyncadd [#allocation5], 4294967168 }
  0x4e   :  { %2328 = dma.done.wait [#allocation8], 256  }
  0x4f   :  { %2329 = vsyncadd [#allocation8], 4294967040 }
  0x50   :  { %2330 = dma.done.wait [#allocation11], 512  }
  0x51   :  { %2331 = vsyncadd [#allocation11], 4294966784 }
  0x52   :  { %2332 = dma.done.wait [#allocation14], 512  }
  0x53   :  { %2333 = vsyncadd [#allocation14], 4294966784  ;;  %v2345_v0 = vmov 0.0   ;;  %vm2346_vm0 = vmmov 0   ;;  %v2121_v1 = vld [vmem:[#allocation12 + $0x8] sm:$0xff]   ;;  %v2122_v2 = vld [vmem:[#allocation12] sm:$0xff]  }
  0x54   :  { %1912 = vmatprep.subr.bf16.mxu0 %v2345_v0  ;;  %1916 = vmatprep.mubr.msk.bf16.mxu0 %vm2346_vm0, %v2345_v0  ;;  %v133_v3 = vld [vmem:[#allocation7] sm:$0xf]  ;;  %vm150_vm1 = vcmask 261120   ;;  %v2123_v4 = vld [vmem:[#allocation12 + $0x8] sm:$0xff]   ;;  %v2127_v5 = vld [vmem:[#allocation13 + $0x8] sm:$0xff]   ;;  %vm195_vm2 = vcmask 257024  }
  0x55   :  { %1920 = vmatprep.subr.bf16.mxu1 %v2345_v0  ;;  %1924 = vmatprep.mubr.msk.bf16.mxu1 %vm2346_vm0, %v2345_v0  ;;  %v2124_v6 = vld [vmem:[#allocation12] sm:$0xff]   ;;  %v2458_v8 = vld [vmem:[#allocation10 + $0x8] sm:$0xff]   ;;  %v2463_v9 = vld [vmem:[#allocation10] sm:$0xff]   ;;  %vm461_vm3 = vcmask 64512   ;;  %s2347_s5 = smov 120   ;;  %vm523_vm4 = vcmask 1043456  }
  0x56   :  { %1913 = vmatpush3.bf16.msra.mxu0 %v2121_v1  ;;  %1921 = vmatpush3.bf16.msra.mxu1 %v2127_v5  ;;  %v260_v7 = vld [vmem:[#allocation7 + $0x4] sm:$0xf]  ;;  %v396_v10 = vld [vmem:[#allocation4] sm:$0xf]  ;;  %v2128_v11 = vld [vmem:[#allocation13] sm:$0xff]   ;;  %s2349_s15 = smov 104  }
  0x57   :  { %1914 = vmatprep.subr.bf16.mxu0 %v2345_v0  ;;  %1922 = vmatprep.subr.bf16.mxu1 %v2345_v0  ;;  %v2129_v12 = vld [vmem:[#allocation13 + $0x8] sm:$0xff]   ;;  %v197_v13 = vld [vmem:[#allocation9] sm:$0xf]  ;;  %v2130_v14 = vld [vmem:[#allocation13] sm:$0xff]  }
  0x58   :  { %v324_v15 = vld [vmem:[#allocation9 + $0x4] sm:$0xf]  ;;  %v2510_v50 = vld [vmem:[%s2738_s3] sm:$0xf]   ;;  %s2348_s3 = smov 112  }
  0x59   :  { %v458_v51 = vunpack.c.0.s8 %v2510_v50 }
  0x5a   :  { %1915 = vmatpush3.bf16.msra.mxu0 %v2122_v2  ;;  %1923 = vmatpush3.bf16.msra.mxu1 %v2128_v11 }
  0x5b   :  { %1928 = vmatprep.subr.bf16.mxu0 %v2345_v0  ;;  %1936 = vmatprep.subr.bf16.mxu1 %v2345_v0  ;;  %vm459_vm5 = vcmp.eq.s32.totalorder %v458_v51, 0 }
  0x5c   :  { %v2514_v52 = vsel %vm459_vm5, -1e+20, %v2345_v0 }
  0x5d   :  { %1917 = vmatmul.mubr.msk.bf16.vlgmr.msra.gmra.mxu0 %vm150_vm1, %v133_v3  ;;  %1925 = vmatmul.mubr.msk.bf16.vlgmr.msra.gmra.mxu1 %vm150_vm1, %v197_v13 }
  0x5e   :  { %1929 = vmatpush3.bf16.msra.mxu0 %v2123_v4  ;;  %1932 = vmatprep.mubr.msk.bf16.mxu0 %vm2346_vm0, %v2345_v0 }
  0x5f   :  { %1930 = vmatprep.subr.bf16.mxu0 %v2345_v0  ;;  %1937 = vmatpush3.bf16.msra.mxu1 %v2129_v12 }
  0x60   :  { %1940 = vmatprep.mubr.msk.bf16.mxu1 %vm2346_vm0, %v2345_v0  ;;  %1938 = vmatprep.subr.bf16.mxu1 %v2345_v0 }
  0x62   :  { %1931 = vmatpush3.bf16.msra.mxu0 %v2124_v6 }
  0x63   :  { %1944 = vmatprep.subr.bf16.mxu0 %v2345_v0  ;;  %1939 = vmatpush3.bf16.msra.mxu1 %v2130_v14 }
  0x64   :  { %1952 = vmatprep.subr.bf16.mxu1 %v2345_v0 }
  0x65   :  { %1933 = vmatmul.mubr.msk.bf16.vlgmr.msra.gmra.mxu0 %vm150_vm1, %v260_v7 }
  0x66   :  { %1945 = vmatpush3.bf16.msra.mxu0 %v2458_v8  ;;  %1948 = vmatprep.mubr.msk.bf16.mxu0 %vm2346_vm0, %v2345_v0 }
  0x67   :  { %1946 = vmatprep.subr.bf16.mxu0 %v2345_v0  ;;  %1941 = vmatmul.mubr.msk.bf16.vlgmr.msra.gmra.mxu1 %vm150_vm1, %v324_v15 }
  0x68   :  { %1954 = vmatprep.mubr.msk.bf16.mxu1 %vm2346_vm0, %v2345_v0 }
  0x6a   :  { %1947 = vmatpush3.bf16.msra.mxu0 %v2463_v9 }
  0x6b   :  { %1958 = vmatprep.subr.bf16.mxu0 %v2345_v0 }
  0x6d   :  { %1949 = vmatmul.mubr.msk.bf16.vlgmr.msra.gmra.mxu0 %vm150_vm1, %v396_v10 }
  0x6e   :  { %1960 = vmatprep.mubr.msk.bf16.mxu0 %vm2346_vm0, %v2345_v0 }
 0x11d   :  { %v188_v16 = vpop.f32.mrf.mxu0  ;;  %v251_v35 = vpop.f32.mrf.mxu1 }
 0x11e   :  { %v194_v17 = vpack.c.bf16 %v188_v16, %v188_v16  ;;  %v257_v36 = vpack.c.bf16 %v251_v35, %v251_v35 }
 0x11f   :  { %v1918_v18 = vpop.f32.mrf.mxu0  ;;  %v1926_v37 = vpop.f32.mrf.mxu1 }
 0x120   :  { %196 = vst.msk [vmem:[#allocation2] sm:$0xf] %vm195_vm2, %v194_v17  ;;  %258 = vst.msk [vmem:[#allocation3] sm:$0xf] %vm195_vm2, %v257_v36 }
 0x121   :  { %v191_v19 = vpop.f32.mrf.mxu0  ;;  %v254_v38 = vpop.f32.mrf.mxu1 }
 0x122   :  { %v392_v19 = vld [vmem:[#allocation15 + $0x4] sm:$0xf] }
 0x123   :  { %v1919_v20 = vpop.f32.mrf.mxu0  ;;  %v1927_v39 = vpop.f32.mrf.mxu1 }
 0x124   :  { %v2536_v20 = vsel %vm523_vm4, %v392_v19, 0 }
 0x125   :  { %v314_v21 = vpop.f32.mrf.mxu0 }
 0x126   :  { %v320_v22 = vpack.c.bf16 %v314_v21, %v314_v21 }
 0x127   :  { %v1934_v23 = vpop.f32.mrf.mxu0  ;;  %v455_v24 = vld [vmem:[#allocation2] sm:$0xf]  ;;  %v378_v40 = vpop.f32.mrf.mxu1  ;;  %v456_v45 = vld [vmem:[#allocation3] sm:$0xf] }
 0x128   :  { %322 = vst.msk [vmem:[#allocation2 + $0x4] sm:$0xf] %vm195_vm2, %v320_v22  ;;  %v466_v25 = vsel %vm461_vm3, %v455_v24, 0  ;;  %v2485_v26 = vcombine.low %v455_v24, %v455_v24  ;;  %v384_v41 = vpack.c.bf16 %v378_v40, %v378_v40  ;;  %v525_v46 = vsel %vm523_vm4, %v456_v45, 0 }
 0x129   :  { %v317_v27 = vpop.f32.mrf.mxu0  ;;  %1953 = vmatpush3.bf16.xpose.msra.mxu1 %v466_v25  ;;  %v1942_v42 = vpop.f32.mrf.mxu1  ;;  %1959 = vmatpush3.bf16.msra.mxu0 %v525_v46  ;;  %v2521_v7 = vcombine.low %v456_v45, %v456_v45  ;;  %v391_v25 = vld [vmem:[#allocation15] sm:$0xf] }
 0x12a   :  { %574 = vrot.lane.b32.xlu0 %v2485_v26, %s2347_s5  ;;  %1964 = vmatprep.subr.bf16.mxu1 %v2345_v0  ;;  %386 = vst.msk [vmem:[#allocation3 + $0x4] sm:$0xf] %vm195_vm2, %v384_v41 }
 0x12b   :  { %v1935_v28 = vpop.f32.mrf.mxu0  ;;  %v381_v43 = vpop.f32.mrf.mxu1  ;;  %1970 = vmatprep.subr.bf16.mxu0 %v2345_v0 }
 0x12d   :  { %v447_v29 = vpop.f32.mrf.mxu0  ;;  %v1943_v44 = vpop.f32.mrf.mxu1 }
 0x12e   :  { %v453_v30 = vmul.f32 0.17677669, %v447_v29  ;;  %v2543_v29 = vsel %vm523_vm4, %v391_v25, 0 }
 0x12f   :  { %v1950_v31 = vpop.f32.mrf.mxu0 }
 0x130   :  { %v2490_v32 = vpack.c.bf16 %v453_v30, %v453_v30 }
 0x131   :  { %v450_v33 = vpop.f32.mrf.mxu0 }
 0x132   :  { %569 = vrot.lane.b32.xlu0 %v2490_v32, %s2347_s5  ;;  %1955 = vmatmul.mubr.msk.bf16.vlgmr.msra.gmra.mxu1 %vm461_vm3, %v2490_v32 }
 0x133   :  { %v1951_v34 = vpop.f32.mrf.mxu0  ;;  %1966 = vmatprep.mubr.msk.bf16.mxu1 %vm2346_vm0, %v2345_v0 }
 0x19c   :  { %v575_v47 = vpop.permute.xlu0 %574 }
 0x19d   :  { %v580_v48 = vsel %vm461_vm3, %v575_v47, 0 }
 0x19e   :  { %1965 = vmatpush3.bf16.xpose.msra.mxu1 %v580_v48 }
 0x19f   :  { %1976 = vmatprep.subr.bf16.mxu1 %v2345_v0 }
 0x1a4   :  { %v570_v49 = vpop.permute.xlu0 %569 }
 0x1a5   :  { %1967 = vmatmul.mubr.msk.bf16.vlgmr.msra.gmra.mxu1 %vm461_vm3, %v570_v49 }
 0x1a6   :  { %1978 = vmatprep.mubr.msk.bf16.mxu1 %vm2346_vm0, %v2345_v0  ;;  %1977 = vmatpush3.bf16.msra.mxu1 %v2536_v20 }
 0x1a7   :  { %1988 = vmatprep.subr.bf16.mxu1 %v2345_v0 }
 0x1f2   :  { %v502_v53 = vpop.f32.mrf.mxu1 }
 0x1f3   :  { %v503_v54 = vadd.f32 %v502_v53, %v2514_v52 }
 0x1f4   :  { %v1956_v55 = vpop.f32.mrf.mxu1 }
 0x1f5   :  { %v508_v56 = vsel %vm461_vm3, %v503_v54, -inf }
 0x1f6   :  { %509 = vmax.xlane.f32.xlu1 %v508_v56  ;;  %v505_v57 = vpop.f32.mrf.mxu1 }
 0x1f8   :  { %v1957_v58 = vpop.f32.mrf.mxu1 }
 0x265   :  { %v616_v59 = vpop.f32.mrf.mxu1 }
 0x266   :  { %v617_v60 = vadd.f32 %v616_v59, %v2514_v52 }
 0x267   :  { %v1968_v61 = vpop.f32.mrf.mxu1 }
 0x268   :  { %v622_v62 = vsel %vm461_vm3, %v617_v60, -inf }
 0x269   :  { %623 = vmax.xlane.f32.xlu1 %v622_v62  ;;  %v619_v63 = vpop.f32.mrf.mxu1 }
 0x26b   :  { %v1969_v1 = vpop.f32.mrf.mxu1 }
 0x27f   :  { %v510_v2 = vpop.xlane.xlu1 %509 }
 0x280   :  { %v511_v3 = vsub.f32 %v503_v54, %v510_v2 }
 0x282   :  { %v512_v4 = vmul.f32 1.442695, %v511_v3 }
 0x284   :  { %2134 = vpow2.f32 %v512_v4 }
 0x291   :  { %v2135_v5 = vpop.eup %2134 }
 0x292   :  { %v514_v6 = vsel %vm461_vm3, %v2135_v5, 0.0 }
 0x293   :  { %515 = vadd.xlane.f32.xlu0 %v514_v6 }
 0x2a9   :  { %840 = vrot.lane.b32.xlu0 %v2521_v7, %s2348_s3 }
 0x2f2   :  { %v624_v10 = vpop.xlane.xlu1 %623 }
 0x2f3   :  { %v625_v11 = vsub.f32 %v617_v60, %v624_v10 }
 0x2f5   :  { %v626_v12 = vmul.f32 1.442695, %v625_v11 }
 0x2f7   :  { %2136 = vpow2.f32 %v626_v12 }
 0x304   :  { %v2137_v13 = vpop.eup %2136 }
 0x305   :  { %v628_v14 = vsel %vm461_vm3, %v2137_v13, 0.0 }
 0x306   :  { %629 = vadd.xlane.f32.xlu1 %v628_v14 }
 0x317   :  { %637 = vrot.lane.b32.xlu1 %v2521_v7, %s2347_s5 }
 0x31b   :  { %780 = vrot.lane.b32.xlu1 %v2485_v26, %s2348_s3 }
 0x31c   :  { %v516_v15 = vpop.xlane.xlu0 %515 }
 0x31d   :  { %2138 = vrcp.f32 %v516_v15 }
 0x31f   :  { %778 = vrot.lane.b32.xlu1 %v2490_v32, %s2348_s3 }
 0x320   :  { %v841_v30 = vpop.permute.xlu0 %840 }
 0x321   :  { %v846_v35 = vsel %vm523_vm4, %v841_v30, 0 }
 0x32a   :  { %v2139_v16 = vpop.eup %2138 }
 0x32b   :  { %v518_v17 = vmul.f32 %v2139_v16, %v2135_v5 }
 0x32d   :  { %v519_v18 = vpack.c.bf16 %v518_v17, %v518_v17 }
 0x32f   :  { %1961 = vmatmul.mubr.msk.bf16.vlgmr.msra.gmra.mxu0 %vm461_vm3, %v519_v18 }
 0x330   :  { %1972 = vmatprep.mubr.msk.bf16.mxu0 %vm2346_vm0, %v2345_v0 }
 0x38f   :  { %v630_v21 = vpop.xlane.xlu1 %629 }
 0x390   :  { %2140 = vrcp.f32 %v630_v21 }
 0x393   :  { %v638_v22 = vpop.permute.xlu1 %637 }
 0x394   :  { %v643_v23 = vsel %vm523_vm4, %v638_v22, 0 }
 0x395   :  { %1971 = vmatpush3.bf16.msra.mxu0 %v643_v23 }
 0x396   :  { %1982 = vmatprep.subr.bf16.mxu0 %v2345_v0 }
 0x397   :  { %v781_v38 = vpop.permute.xlu1 %780 }
 0x398   :  { %v786_v42 = vsel %vm461_vm3, %v781_v38, 0 }
 0x39b   :  { %v779_v45 = vpop.permute.xlu1 %778 }
 0x39d   :  { %v2141_v24 = vpop.eup %2140 }
 0x39e   :  { %v632_v27 = vmul.f32 %v2141_v24, %v2137_v13 }
 0x3a0   :  { %v633_v28 = vpack.c.bf16 %v632_v27, %v632_v27 }
 0x3a2   :  { %1973 = vmatmul.mubr.msk.bf16.vlgmr.msra.gmra.mxu0 %vm461_vm3, %v633_v28 }
 0x3a3   :  { %1983 = vmatpush3.bf16.msra.mxu0 %v2543_v29  ;;  %1984 = vmatprep.mubr.msk.bf16.mxu0 %vm2346_vm0, %v2345_v0 }
 0x3a4   :  { %1994 = vmatprep.subr.bf16.mxu0 %v2345_v0 }
 0x3ef   :  { %v561_v31 = vpop.f32.mrf.mxu0 }
 0x3f0   :  { %v567_v33 = vpack.c.bf16 %v561_v31, %v561_v31 }
 0x3f1   :  { %v1962_v34 = vpop.f32.mrf.mxu0 }
 0x3f2   :  { %1985 = vmatmul.mubr.msk.bf16.vlgmr.msra.gmra.mxu0 %vm461_vm3, %v567_v33  ;;  %v1150_v34 = vld [vmem:[#allocation2 + $0x4] sm:$0xf] }
 0x3f3   :  { %1995 = vmatpush3.bf16.msra.mxu0 %v846_v35  ;;  %v564_v36 = vpop.f32.mrf.mxu0  ;;  %1996 = vmatprep.mubr.msk.bf16.mxu0 %vm2346_vm0, %v2345_v0  ;;  %v2595_v35 = vcombine.low %v1150_v34, %v1150_v34 }
 0x3f4   :  { %2006 = vmatprep.subr.bf16.mxu0 %v2345_v0 }
 0x3f5   :  { %v1963_v37 = vpop.f32.mrf.mxu0 }
 0x462   :  { %v679_v39 = vpop.f32.mrf.mxu0 }
 0x463   :  { %v685_v40 = vpack.c.bf16 %v679_v39, %v679_v39 }
 0x464   :  { %v1974_v41 = vpop.f32.mrf.mxu0 }
 0x465   :  { %1979 = vmatmul.mubr.msk.bf16.vlgmr.msra.gmra.mxu1 %vm461_vm3, %v685_v40  ;;  %v394_v41 = vld [vmem:[#allocation15 + $0xc] sm:$0xf] }
 0x466   :  { %1989 = vmatpush3.bf16.xpose.msra.mxu1 %v786_v42  ;;  %v682_v43 = vpop.f32.mrf.mxu0  ;;  %1990 = vmatprep.mubr.msk.bf16.mxu1 %vm2346_vm0, %v2345_v0  ;;  %v2602_v42 = vsel %vm523_vm4, %v394_v41, 0 }
 0x467   :  { %2000 = vmatprep.subr.bf16.mxu1 %v2345_v0 }
 0x468   :  { %v1975_v44 = vpop.f32.mrf.mxu0 }
 0x46d   :  { %1991 = vmatmul.mubr.msk.bf16.vlgmr.msra.gmra.mxu1 %vm461_vm3, %v779_v45 }
 0x46e   :  { %2002 = vmatprep.mubr.msk.bf16.mxu1 %vm2346_vm0, %v2345_v0 }
 0x4b2   :  { %v2563_v46 = vpop.f32.mrf.mxu0 }
 0x4b4   :  { %v1986_v47 = vpop.f32.mrf.mxu0 }
 0x4b6   :  { %v775_v48 = vpop.f32.mrf.mxu0 }
 0x4b7   :  { %v1103_v48 = vld [vmem:[#allocation4 + $0x4] sm:$0xf] }
 0x4b8   :  { %v1987_v49 = vpop.f32.mrf.mxu0 }
 0x4b9   :  { %v2614_v49 = vld [vmem:[#allocation3 + $0x4] sm:$0xf] }
 0x525   :  { %v2565_v51 = vpop.f32.mrf.mxu1 }
 0x527   :  { %v1980_v53 = vpop.f32.mrf.mxu1 }
 0x529   :  { %v729_v54 = vpop.f32.mrf.mxu1 }
 0x52b   :  { %v1981_v55 = vpop.f32.mrf.mxu1 }
 0x52d   :  { %v822_v56 = vpop.f32.mrf.mxu1 }
 0x52e   :  { %v823_v57 = vadd.f32 %v822_v56, %v2514_v52 }
 0x52f   :  { %v1992_v58 = vpop.f32.mrf.mxu1 }
 0x530   :  { %v828_v59 = vsel %vm461_vm3, %v823_v57, -inf }
 0x531   :  { %829 = vmax.xlane.f32.xlu1 %v828_v59  ;;  %v825_v60 = vpop.f32.mrf.mxu1 }
 0x533   :  { %v1993_v61 = vpop.f32.mrf.mxu1 }
 0x5ba   :  { %v830_v62 = vpop.xlane.xlu1 %829 }
 0x5bb   :  { %v831_v63 = vsub.f32 %v823_v57, %v830_v62 }
 0x5bd   :  { %v832_v1 = vmul.f32 1.442695, %v831_v63 }
 0x5bf   :  { %2142 = vpow2.f32 %v832_v1 }
 0x5cc   :  { %v2143_v2 = vpop.eup %2142 }
 0x5cd   :  { %v834_v3 = vsel %vm461_vm3, %v2143_v2, 0.0 }
 0x5ce   :  { %835 = vadd.xlane.f32.xlu0 %v834_v3  ;;  %v2646_v3 = vld [vmem:[%s2743_s8] ss:$0 sm:$0xff]  ;;  %s2350_s8 = smov [#allocation16]  }
 0x5cf   :  { %s1785_s24 = sshll.u32 %s2350_s8, 4  ;;  %s1786_s24 = int_to_ptr.vmem [resolvable:$true] %s1785_s24 }
 0x5d0   :  { %s2306_s1 = scalar_lea.vmem %s1786_s24, 256  ;;  %p2311_p8 = scmp.lt.s32.totalorder %s1786_s24, %s1786_s24 }
 0x5d1   :  { %p2307_p7 = scmp.ne.s32.totalorder %s1786_s24, %s2306_s1  ;;  %p2312_p9 = scmp.lt.s32.totalorder %s2306_s1, %s2306_s1 }
 0x5d3   :  { %p2313_p10 = por %p2312_p9, %p2311_p8 }
 0x5d5   :  { %p2314_p11 = pnand %p2313_p10, %p2307_p7 }
 0x5e4   :  { %938 = vrot.lane.b32.xlu0 %v2485_v26, %s2349_s15 }
 0x5e8   :  { %936 = vrot.lane.b32.xlu0 %v2490_v32, %s2349_s15  ;;  %v393_v32 = vld [vmem:[#allocation15 + $0x8] sm:$0xf] }
 0x5e9   :  { %v2583_v13 = vsel %vm523_vm4, %v393_v32, 0 }
 0x5ea   :  { %2001 = vmatpush3.bf16.msra.mxu1 %v2583_v13 }
 0x5eb   :  { %2012 = vmatprep.subr.bf16.mxu1 %v2345_v0 }
 0x657   :  { %v836_v4 = vpop.xlane.xlu0 %835 }
 0x658   :  { %2144 = vrcp.f32 %v836_v4 }
 0x65b   :  { %v939_v10 = vpop.permute.xlu0 %938 }
 0x65c   :  { %v944_v12 = vsel %vm461_vm3, %v939_v10, 0 }
 0x65f   :  { %v937_v26 = vpop.permute.xlu0 %936 }
 0x665   :  { %v2145_v5 = vpop.eup %2144 }
 0x666   :  { %v838_v6 = vmul.f32 %v2145_v5, %v2143_v2 }
 0x668   :  { %v839_v11 = vpack.c.bf16 %v838_v6, %v838_v6  ;;  %v1155_v6 = vunpack.c.1.s8 %v2510_v50 }
 0x66a   :  { %1997 = vmatmul.mubr.msk.bf16.vlgmr.msra.gmra.mxu0 %vm461_vm3, %v839_v11  ;;  %vm1156_vm6 = vcmp.eq.s32.totalorder %v1155_v6, 0 }
 0x66b   :  { %2007 = vmatpush3.bf16.xpose.msra.mxu0 %v944_v12  ;;  %2008 = vmatprep.mubr.msk.bf16.mxu0 %vm2346_vm0, %v2345_v0 }
 0x66c   :  { %2018 = vmatprep.subr.bf16.mxu0 %v2345_v0 }
 0x672   :  { %2009 = vmatmul.mubr.msk.bf16.vlgmr.msra.gmra.mxu0 %vm461_vm3, %v937_v26  ;;  %v2652_v26 = vsel %vm1156_vm6, -1e+20, %v2345_v0 }
 0x673   :  { %2020 = vmatprep.mubr.msk.bf16.mxu0 %vm2346_vm0, %v2345_v0  ;;  %2019 = vmatpush3.bf16.msra.mxu0 %v2602_v42 }
 0x674   :  { %2032 = vmatprep.subr.bf16.mxu0 %v2345_v0 }
 0x72a   :  { %v882_v14 = vpop.f32.mrf.mxu0 }
 0x72b   :  { %v888_v15 = vpack.c.bf16 %v882_v14, %v882_v14 }
 0x72c   :  { %v1998_v16 = vpop.f32.mrf.mxu0 }
 0x72d   :  { %2003 = vmatmul.mubr.msk.bf16.vlgmr.msra.gmra.mxu1 %vm461_vm3, %v888_v15 }
 0x72e   :  { %v885_v17 = vpop.f32.mrf.mxu0  ;;  %2014 = vmatprep.mubr.msk.bf16.mxu1 %vm2346_vm0, %v2345_v0 }
 0x730   :  { %v1999_v18 = vpop.f32.mrf.mxu0 }
 0x732   :  { %v980_v19 = vpop.f32.mrf.mxu0 }
 0x733   :  { %v981_v21 = vadd.f32 %v980_v19, %v2514_v52  ;;  %v773_v52 = vadd.f32 %v2563_v46, %v2565_v51  ;;  %v1220_v51 = vsel %vm523_vm4, %v2614_v49, 0 }
 0x734   :  { %v2010_v22 = vpop.f32.mrf.mxu0 }
 0x735   :  { %v986_v23 = vsel %vm461_vm3, %v981_v21, -inf }
 0x736   :  { %987 = vmax.xlane.f32.xlu0 %v986_v23  ;;  %v983_v24 = vpop.f32.mrf.mxu0 }
 0x738   :  { %v2011_v25 = vpop.f32.mrf.mxu0 }
 0x7bf   :  { %v988_v27 = vpop.xlane.xlu0 %987 }
 0x7c0   :  { %v989_v28 = vsub.f32 %v981_v21, %v988_v27 }
 0x7c2   :  { %v990_v30 = vmul.f32 1.442695, %v989_v28 }
 0x7c4   :  { %2146 = vpow2.f32 %v990_v30 }
 0x7d1   :  { %v2147_v31 = vpop.eup %2146 }
 0x7d2   :  { %v992_v33 = vsel %vm461_vm3, %v2147_v31, 0.0 }
 0x7d3   :  { %993 = vadd.xlane.f32.xlu1 %v992_v33 }
 0x7e4   :  { %998 = vrot.lane.b32.xlu1 %v2521_v7, %s2349_s15 }
 0x7e8   :  { %1269 = vrot.lane.b32.xlu1 %v2595_v35, %s2347_s5 }
 0x7ed   :  { %v929_v36 = vpop.f32.mrf.mxu1 }
 0x7ee   :  { %v935_v37 = vadd.f32 %v929_v36, %v773_v52 }
 0x7ef   :  { %v2004_v38 = vpop.f32.mrf.mxu1 }
 0x7f0   :  { %v2664_v38 = vcombine.low %v2614_v49, %v2614_v49 }
 0x7f1   :  { %v932_v39 = vpop.f32.mrf.mxu1 }
 0x7f3   :  { %v2005_v40 = vpop.f32.mrf.mxu1 }
 0x85c   :  { %v994_v7 = vpop.xlane.xlu1 %993 }
 0x85d   :  { %2148 = vrcp.f32 %v994_v7 }
 0x860   :  { %v999_v43 = vpop.permute.xlu1 %998 }
 0x861   :  { %v1004_v44 = vsel %vm523_vm4, %v999_v43, 0 }
 0x862   :  { %2013 = vmatpush3.bf16.msra.mxu1 %v1004_v44 }
 0x863   :  { %2024 = vmatprep.subr.bf16.mxu1 %v2345_v0 }
 0x864   :  { %v1270_v59 = vpop.permute.xlu1 %1269 }
 0x865   :  { %v1275_v63 = vsel %vm461_vm3, %v1270_v59, 0 }
 0x86a   :  { %v2149_v45 = vpop.eup %2148 }
 0x86b   :  { %v996_v46 = vmul.f32 %v2149_v45, %v2147_v31 }
 0x86d   :  { %v997_v47 = vpack.c.bf16 %v996_v46, %v996_v46 }
 0x86f   :  { %2015 = vmatmul.mubr.msk.bf16.vlgmr.msra.gmra.mxu1 %vm461_vm3, %v997_v47 }
 0x870   :  { %2025 = vmatpush3.bf16.msra.mxu1 %v2458_v8  ;;  %2028 = vmatprep.mubr.msk.bf16.mxu1 %vm2346_vm0, %v2345_v0 }
 0x871   :  { %2026 = vmatprep.subr.bf16.mxu1 %v2345_v0 }
 0x874   :  { %2027 = vmatpush3.bf16.msra.mxu1 %v2463_v9  ;;  %v1162_v9 = vsel %vm461_vm3, %v1150_v34, 0 }
 0x875   :  { %2038 = vmatprep.subr.bf16.mxu1 %v2345_v0 }
 0x877   :  { %2029 = vmatmul.mubr.msk.bf16.vlgmr.msra.gmra.mxu1 %vm150_vm1, %v1103_v48 }
 0x878   :  { %2039 = vmatpush3.bf16.msra.mxu1 %v1220_v51  ;;  %2040 = vmatprep.mubr.msk.bf16.mxu1 %vm2346_vm0, %v2345_v0 }
 0x879   :  { %2050 = vmatprep.subr.bf16.mxu1 %v2345_v0 }
 0x92f   :  { %v1040_v8 = vpop.f32.mrf.mxu1 }
 0x930   :  { %v1046_v53 = vpack.c.bf16 %v1040_v8, %v1040_v8 }
 0x931   :  { %v2016_v54 = vpop.f32.mrf.mxu1 }
 0x932   :  { %2021 = vmatmul.mubr.msk.bf16.vlgmr.msra.gmra.mxu0 %vm461_vm3, %v1046_v53 }
 0x933   :  { %2033 = vmatpush3.bf16.xpose.msra.mxu0 %v1162_v9  ;;  %v1043_v55 = vpop.f32.mrf.mxu1  ;;  %2034 = vmatprep.mubr.msk.bf16.mxu0 %vm2346_vm0, %v2345_v0 }
 0x934   :  { %2044 = vmatprep.subr.bf16.mxu0 %v2345_v0 }
 0x935   :  { %v2017_v56 = vpop.f32.mrf.mxu1 }
 0x937   :  { %v1141_v57 = vpop.f32.mrf.mxu1 }
 0x938   :  { %v1147_v58 = vmul.f32 0.17677669, %v1141_v57 }
 0x939   :  { %v2030_v60 = vpop.f32.mrf.mxu1 }
 0x93a   :  { %v2628_v61 = vpack.c.bf16 %v1147_v58, %v1147_v58 }
 0x93b   :  { %v1144_v62 = vpop.f32.mrf.mxu1 }
 0x93c   :  { %1264 = vrot.lane.b32.xlu1 %v2628_v61, %s2347_s5  ;;  %2035 = vmatmul.mubr.msk.bf16.vlgmr.msra.gmra.mxu0 %vm461_vm3, %v2628_v61 }
 0x93d   :  { %2045 = vmatpush3.bf16.xpose.msra.mxu0 %v1275_v63  ;;  %v2031_v1 = vpop.f32.mrf.mxu1  ;;  %2046 = vmatprep.mubr.msk.bf16.mxu0 %vm2346_vm0, %v2345_v0 }
 0x93e   :  { %2056 = vmatprep.subr.bf16.mxu0 %v2345_v0 }
 0x9ae   :  { %v1265_v2 = vpop.permute.xlu1 %1264 }
 0x9af   :  { %2047 = vmatmul.mubr.msk.bf16.vlgmr.msra.gmra.mxu0 %vm461_vm3, %v1265_v2 }
 0x9b0   :  { %2057 = vmatpush3.bf16.msra.mxu0 %v2536_v20  ;;  %2058 = vmatprep.mubr.msk.bf16.mxu0 %vm2346_vm0, %v2345_v0 }
 0x9b1   :  { %2068 = vmatprep.subr.bf16.mxu0 %v2345_v0 }
 0x9f2   :  { %v1087_v4 = vpop.f32.mrf.mxu0 }
 0x9f3   :  { %v1093_v5 = vadd.f32 %v1087_v4, %v935_v37 }
 0x9f4   :  { %v2022_v10 = vpop.f32.mrf.mxu0 }
 0x9f5   :  { %v1100_v11 = vadd.f32 %v2646_v3, %v1093_v5 }
 0x9f6   :  { %v1090_v12 = vpop.f32.mrf.mxu0 }
 0x9f7   :  { %1101 = vst.msk [vmem:[#allocation16] sm:$0xff] %vm150_vm1, %v1100_v11 }
 0x9f8   :  { %v2023_v20 = vpop.f32.mrf.mxu0 }
 0x9fc   :  { %v1198_v32 = vpop.f32.mrf.mxu0 }
 0x9fd   :  { %v1199_v14 = vadd.f32 %v1198_v32, %v2652_v26 }
 0x9fe   :  { %v2036_v15 = vpop.f32.mrf.mxu0 }
 0x9ff   :  { %v1204_v16 = vsel %vm461_vm3, %v1199_v14, -inf }
 0xa00   :  { %1205 = vmax.xlane.f32.xlu1 %v1204_v16  ;;  %v1201_v17 = vpop.f32.mrf.mxu0 }
 0xa02   :  { %v2037_v50 = vpop.f32.mrf.mxu0 }
 0xa11   :  { %1467 = vrot.lane.b32.xlu1 %v2628_v61, %s2348_s3 }
 0xa6f   :  { %v1311_v18 = vpop.f32.mrf.mxu0 }
 0xa70   :  { %v1312_v19 = vadd.f32 %v1311_v18, %v2652_v26 }
 0xa71   :  { %v2048_v21 = vpop.f32.mrf.mxu0 }
 0xa72   :  { %v1317_v22 = vsel %vm461_vm3, %v1312_v19, -inf }
 0xa73   :  { %1318 = vmax.xlane.f32.xlu0 %v1317_v22  ;;  %v1314_v23 = vpop.f32.mrf.mxu0 }
 0xa75   :  { %v2049_v24 = vpop.f32.mrf.mxu0 }
 0xa89   :  { %v1206_v25 = vpop.xlane.xlu1 %1205 }
 0xa8a   :  { %v1207_v27 = vsub.f32 %v1199_v14, %v1206_v25 }
 0xa8c   :  { %v1208_v28 = vmul.f32 1.442695, %v1207_v27 }
 0xa8d   :  { %v1468_v60 = vpop.permute.xlu1 %1467 }
 0xa8e   :  { %2150 = vpow2.f32 %v1208_v28 }
 0xa9b   :  { %v2151_v30 = vpop.eup %2150 }
 0xa9c   :  { %v1210_v31 = vsel %vm461_vm3, %v2151_v30, 0.0 }
 0xa9d   :  { %1211 = vadd.xlane.f32.xlu0 %v1210_v31 }
 0xafc   :  { %v1319_v33 = vpop.xlane.xlu0 %1318 }
 0xafd   :  { %v1320_v34 = vsub.f32 %v1312_v19, %v1319_v33 }
 0xaff   :  { %v1321_v52 = vmul.f32 1.442695, %v1320_v34 }
 0xb01   :  { %2152 = vpow2.f32 %v1321_v52 }
 0xb0e   :  { %v2153_v36 = vpop.eup %2152 }
 0xb0f   :  { %v1323_v37 = vsel %vm461_vm3, %v2153_v36, 0.0 }
 0xb10   :  { %1324 = vadd.xlane.f32.xlu0 %v1323_v37 }
 0xb26   :  { %1332 = vrot.lane.b32.xlu0 %v2664_v38, %s2347_s5  ;;  %v1212_v39 = vpop.xlane.xlu0 %1211 }
 0xb27   :  { %2154 = vrcp.f32 %v1212_v39 }
 0xb2a   :  { %1469 = vrot.lane.b32.xlu0 %v2595_v35, %s2348_s3 }
 0xb34   :  { %v2155_v40 = vpop.eup %2154 }
 0xb35   :  { %v1214_v41 = vmul.f32 %v2155_v40, %v2151_v30 }
 0xb37   :  { %v1215_v7 = vpack.c.bf16 %v1214_v41, %v1214_v41 }
 0xb39   :  { %2041 = vmatmul.mubr.msk.bf16.vlgmr.msra.gmra.mxu1 %vm461_vm3, %v1215_v7 }
 0xb3a   :  { %2052 = vmatprep.mubr.msk.bf16.mxu1 %vm2346_vm0, %v2345_v0 }
 0xb99   :  { %v1325_v43 = vpop.xlane.xlu0 %1324 }
 0xb9a   :  { %2156 = vrcp.f32 %v1325_v43 }
 0xb9d   :  { %v1333_v44 = vpop.permute.xlu0 %1332 }
 0xb9e   :  { %v1338_v45 = vsel %vm523_vm4, %v1333_v44, 0 }
 0xb9f   :  { %2051 = vmatpush3.bf16.msra.mxu1 %v1338_v45 }
 0xba0   :  { %2062 = vmatprep.subr.bf16.mxu1 %v2345_v0 }
 0xba1   :  { %v1470_v9 = vpop.permute.xlu0 %1469 }
 0xba7   :  { %v2157_v46 = vpop.eup %2156 }
 0xba8   :  { %v1327_v47 = vmul.f32 %v2157_v46, %v2153_v36 }
 0xbaa   :  { %v1328_v48 = vpack.c.bf16 %v1327_v47, %v1327_v47 }
 0xbac   :  { %2053 = vmatmul.mubr.msk.bf16.vlgmr.msra.gmra.mxu1 %vm461_vm3, %v1328_v48 }
 0xbad   :  { %2063 = vmatpush3.bf16.msra.mxu1 %v2543_v29  ;;  %2064 = vmatprep.mubr.msk.bf16.mxu1 %vm2346_vm0, %v2345_v0  ;;  %v1475_v29 = vsel %vm461_vm3, %v1470_v9, 0 }
 0xbae   :  { %2074 = vmatprep.subr.bf16.mxu1 %v2345_v0 }
 0xbf9   :  { %v1256_v49 = vpop.f32.mrf.mxu1 }
 0xbfa   :  { %v1262_v51 = vpack.c.bf16 %v1256_v49, %v1256_v49 }
 0xbfb   :  { %v2042_v8 = vpop.f32.mrf.mxu1 }
 0xbfc   :  { %2065 = vmatmul.mubr.msk.bf16.vlgmr.msra.gmra.mxu1 %vm461_vm3, %v1262_v51 }
 0xbfd   :  { %v1259_v53 = vpop.f32.mrf.mxu1  ;;  %2076 = vmatprep.mubr.msk.bf16.mxu1 %vm2346_vm0, %v2345_v0 }
 0xbff   :  { %v2043_v54 = vpop.f32.mrf.mxu1 }
 0xc6c   :  { %v1374_v55 = vpop.f32.mrf.mxu1 }
 0xc6d   :  { %v1380_v56 = vpack.c.bf16 %v1374_v55, %v1374_v55 }
 0xc6e   :  { %v2054_v57 = vpop.f32.mrf.mxu1 }
 0xc6f   :  { %2059 = vmatmul.mubr.msk.bf16.vlgmr.msra.gmra.mxu0 %vm461_vm3, %v1380_v56 }
 0xc70   :  { %2069 = vmatpush3.bf16.xpose.msra.mxu0 %v1475_v29  ;;  %v1377_v58 = vpop.f32.mrf.mxu1  ;;  %2070 = vmatprep.mubr.msk.bf16.mxu0 %vm2346_vm0, %v2345_v0 }
 0xc71   :  { %2080 = vmatprep.subr.bf16.mxu0 %v2345_v0 }
 0xc72   :  { %v2055_v59 = vpop.f32.mrf.mxu1 }
 0xc77   :  { %2071 = vmatmul.mubr.msk.bf16.vlgmr.msra.gmra.mxu0 %vm461_vm3, %v1468_v60 }
 0xc78   :  { %2081 = vmatpush3.bf16.msra.mxu0 %v2583_v13  ;;  %2082 = vmatprep.mubr.msk.bf16.mxu0 %vm2346_vm0, %v2345_v0 }
 0xc79   :  { %2092 = vmatprep.subr.bf16.mxu0 %v2345_v0 }
 0xcbc   :  { %v2693_v62 = vpop.f32.mrf.mxu1 }
 0xcbe   :  { %v2066_v63 = vpop.f32.mrf.mxu1 }
 0xcc0   :  { %v1464_v1 = vpop.f32.mrf.mxu1 }
 0xcc2   :  { %v2067_v2 = vpop.f32.mrf.mxu1 }
 0xd2f   :  { %v2695_v4 = vpop.f32.mrf.mxu0 }
 0xd30   :  { %v1462_v46 = vadd.f32 %v2693_v62, %v2695_v4 }
 0xd31   :  { %v2060_v5 = vpop.f32.mrf.mxu0 }
 0xd33   :  { %v1421_v6 = vpop.f32.mrf.mxu0 }
 0xd35   :  { %v2061_v10 = vpop.f32.mrf.mxu0 }
 0xd37   :  { %v1511_v11 = vpop.f32.mrf.mxu0 }
 0xd38   :  { %v1512_v12 = vadd.f32 %v1511_v11, %v2652_v26 }
 0xd39   :  { %v2072_v20 = vpop.f32.mrf.mxu0 }
 0xd3a   :  { %v1517_v13 = vsel %vm461_vm3, %v1512_v12, -inf }
 0xd3b   :  { %1518 = vmax.xlane.f32.xlu0 %v1517_v13  ;;  %v1514_v32 = vpop.f32.mrf.mxu0 }
 0xd3d   :  { %v2073_v14 = vpop.f32.mrf.mxu0 }
 0xd51   :  { %1529 = vrot.lane.b32.xlu0 %v2664_v38, %s2348_s3 }
 0xd55   :  { %1622 = vrot.lane.b32.xlu0 %v2628_v61, %s2349_s15 }
 0xdc4   :  { %v1519_v15 = vpop.xlane.xlu0 %1518 }
 0xdc5   :  { %v1520_v16 = vsub.f32 %v1512_v12, %v1519_v15 }
 0xdc7   :  { %v1521_v17 = vmul.f32 1.442695, %v1520_v16 }
 0xdc8   :  { %v1530_v50 = vpop.permute.xlu0 %1529 }
 0xdc9   :  { %2158 = vpow2.f32 %v1521_v17  ;;  %v1535_v18 = vsel %vm523_vm4, %v1530_v50, 0 }
 0xdca   :  { %2075 = vmatpush3.bf16.msra.mxu1 %v1535_v18 }
 0xdcb   :  { %2086 = vmatprep.subr.bf16.mxu1 %v2345_v0 }
 0xdcc   :  { %v1623_v28 = vpop.permute.xlu0 %1622 }
 0xdd6   :  { %v2159_v19 = vpop.eup %2158 }
 0xdd7   :  { %v1523_v21 = vsel %vm461_vm3, %v2159_v19, 0.0 }
 0xdd8   :  { %1524 = vadd.xlane.f32.xlu1 %v1523_v21 }
 0xde9   :  { %1624 = vrot.lane.b32.xlu1 %v2595_v35, %s2349_s15 }
 0xe61   :  { %v1525_v22 = vpop.xlane.xlu1 %1524 }
 0xe62   :  { %2160 = vrcp.f32 %v1525_v22 }
 0xe65   :  { %v1625_v24 = vpop.permute.xlu1 %1624 }
 0xe66   :  { %v1630_v27 = vsel %vm461_vm3, %v1625_v24, 0 }
 0xe6f   :  { %v2161_v61 = vpop.eup %2160 }
 0xe70   :  { %v1527_v23 = vmul.f32 %v2161_v61, %v2159_v19 }
 0xe72   :  { %v1528_v25 = vpack.c.bf16 %v1527_v23, %v1527_v23 }
 0xe74   :  { %2077 = vmatmul.mubr.msk.bf16.vlgmr.msra.gmra.mxu1 %vm461_vm3, %v1528_v25 }
 0xe75   :  { %2087 = vmatpush3.bf16.xpose.msra.mxu1 %v1630_v27  ;;  %2088 = vmatprep.mubr.msk.bf16.mxu1 %vm2346_vm0, %v2345_v0 }
 0xe76   :  { %2098 = vmatprep.subr.bf16.mxu1 %v2345_v0 }
 0xe7c   :  { %2089 = vmatmul.mubr.msk.bf16.vlgmr.msra.gmra.mxu1 %vm461_vm3, %v1623_v28 }
 0xe7d   :  { %2099 = vmatpush3.bf16.msra.mxu1 %v2602_v42  ;;  %2100 = vmatprep.mubr.msk.bf16.mxu1 %vm2346_vm0, %v2345_v0 }
 0xf34   :  { %v1571_v35 = vpop.f32.mrf.mxu1 }
 0xf35   :  { %v1577_v30 = vpack.c.bf16 %v1571_v35, %v1571_v35 }
 0xf36   :  { %v2078_v31 = vpop.f32.mrf.mxu1 }
 0xf37   :  { %2083 = vmatmul.mubr.msk.bf16.vlgmr.msra.gmra.mxu0 %vm461_vm3, %v1577_v30 }
 0xf38   :  { %v1574_v33 = vpop.f32.mrf.mxu1  ;;  %2094 = vmatprep.mubr.msk.bf16.mxu0 %vm2346_vm0, %v2345_v0 }
 0xf3a   :  { %v2079_v34 = vpop.f32.mrf.mxu1 }
 0xf3c   :  { %v1666_v52 = vpop.f32.mrf.mxu1 }
 0xf3d   :  { %v1667_v36 = vadd.f32 %v1666_v52, %v2652_v26 }
 0xf3e   :  { %v2090_v37 = vpop.f32.mrf.mxu1 }
 0xf3f   :  { %v1672_v39 = vsel %vm461_vm3, %v1667_v36, -inf }
 0xf40   :  { %1673 = vmax.xlane.f32.xlu0 %v1672_v39  ;;  %v1669_v42 = vpop.f32.mrf.mxu1 }
 0xf42   :  { %v2091_v40 = vpop.f32.mrf.mxu1 }
 0xf56   :  { %1684 = vrot.lane.b32.xlu0 %v2664_v38, %s2349_s15 }
 0xfc9   :  { %v1674_v41 = vpop.xlane.xlu0 %1673 }
 0xfca   :  { %v1675_v7 = vsub.f32 %v1667_v36, %v1674_v41 }
 0xfcc   :  { %v1676_v43 = vmul.f32 1.442695, %v1675_v7 }
 0xfcd   :  { %v1685_v44 = vpop.permute.xlu0 %1684 }
 0xfce   :  { %2162 = vpow2.f32 %v1676_v43  ;;  %v1690_v0 = vsel %vm523_vm4, %v1685_v44, 0 }
 0xfcf   :  { %2093 = vmatpush3.bf16.msra.mxu0 %v1690_v0 }
 0xfdb   :  { %v2163_v45 = vpop.eup %2162 }
 0xfdc   :  { %v1678_v26 = vsel %vm461_vm3, %v2163_v45, 0.0 }
 0xfdd   :  { %1679 = vadd.xlane.f32.xlu1 %v1678_v26 }
 0xff7   :  { %v1615_v47 = vpop.f32.mrf.mxu0 }
 0xff8   :  { %v1621_v48 = vadd.f32 %v1615_v47, %v1462_v46 }
 0xff9   :  { %v2084_v49 = vpop.f32.mrf.mxu0 }
 0xffb   :  { %v1618_v51 = vpop.f32.mrf.mxu0 }
 0xffd   :  { %v2085_v38 = vpop.f32.mrf.mxu0 }
0x1066   :  { %v1680_v8 = vpop.xlane.xlu1 %1679 }
0x1067   :  { %2164 = vrcp.f32 %v1680_v8 }
0x1074   :  { %v2165_v53 = vpop.eup %2164 }
0x1075   :  { %v1682_v54 = vmul.f32 %v2165_v53, %v2163_v45 }
0x1077   :  { %v1683_v9 = vpack.c.bf16 %v1682_v54, %v1682_v54 }
0x1079   :  { %2095 = vmatmul.mubr.msk.bf16.vlgmr.msra.gmra.mxu0 %vm461_vm3, %v1683_v9 }
0x1139   :  { %v1726_v55 = vpop.f32.mrf.mxu0 }
0x113a   :  { %v1732_v56 = vpack.c.bf16 %v1726_v55, %v1726_v55 }
0x113b   :  { %v2096_v57 = vpop.f32.mrf.mxu0 }
0x113c   :  { %2101 = vmatmul.mubr.msk.bf16.vlgmr.msra.gmra.mxu1 %vm461_vm3, %v1732_v56 }
0x113d   :  { %v1729_v29 = vpop.f32.mrf.mxu0 }
0x113f   :  { %v2097_v58 = vpop.f32.mrf.mxu0 }
0x11fc   :  { %v1770_v59 = vpop.f32.mrf.mxu1 }
0x11fd   :  { %v1776_v60 = vadd.f32 %v1770_v59, %v1621_v48 }
0x11fe   :  { %v2102_v62 = vpop.f32.mrf.mxu1 }
0x11ff   :  { %v1777_v63 = vadd.f32 %v2646_v3, %v1776_v60 }
0x1200   :  { %v1773_v1 = vpop.f32.mrf.mxu1 }
0x1201   :  { %1779 = vst.msk [vmem:[#allocation16 + $0x8] sm:$0xff] %vm150_vm1, %v1777_v63 }
0x1202   :  { %v2103_v2 = vpop.f32.mrf.mxu1 }
0x1203   :  { %2317 = shalt.err (!%p2314_p11)
}
0x1204   :  { %s2351_s25 = smov 128   ;;  %s2352_s26 = smov 8  }
0x1205   :  { %1791 = dma.vmem_to_hbm [thread:$0]  %s1786_s24, 256, %s2744_s9, [#allocation6], %s2351_s25, %s2351_s25, %s2352_s26  }
0x1206   :  { %2334 = dma.done.wait [#allocation6], 256  }
0x1207   :  { %2335 = vsyncadd [#allocation6], 4294967040 }
0x1208   :  { %1795 = vsyncpa [#allocation5], 1 }
0x1209   :  { %1796 = vsyncpa [#allocation8], 1 }
0x120a   :  { %1797 = vsyncpa [#allocation11], 1 }
0x120b   :  { %1798 = vsyncpa [#allocation14], 1 }
0x120c   :  { %1799 = vsyncpa [#allocation6], 1 }

</bundles_post_ra>
